<compile_context>
chip_gen: v5e
topology: v5e:2x2
jax: 0.10.0
libtpu: 0.0.40
codegen_flags: <defaults>
</compile_context>

<pallas_src>
import jax
import jax.numpy as jnp
from jax import lax
from jax.experimental import pallas as pl
from jax.experimental.pallas import tpu as pltpu

# ----------------------------- small BERT config -----------------------------
VOCAB = 100
MAX_POS = 16
TYPE_VOCAB = 2
HIDDEN = 32
N_HEADS = 2
HEAD_DIM = HIDDEN // N_HEADS
INTER = 64
N_LAYERS = 2
LN_EPS = 1e-12

MM_DTYPE = jnp.bfloat16  # MXU operand dtype (accumulation stays f32)


# ------------------------------- in-kernel math --------------------------------
def _gelu(x):
    # TODO(synk): HF bert-base-uncased uses exact erf GELU; tanh approx differs slightly.
    c = jnp.float32(0.7978845608028654)  # sqrt(2/pi)
    return 0.5 * x * (1.0 + jnp.tanh(c * (x + 0.044715 * x * x * x)))


def _layernorm(x, gamma, beta):
    mean = jnp.mean(x, axis=-1, keepdims=True)
    xc = x - mean
    var = jnp.mean(xc * xc, axis=-1, keepdims=True)
    return xc * lax.rsqrt(var + jnp.float32(LN_EPS)) * gamma + beta


# ------------------------------- the fused kernel ------------------------------
def _bert_kernel(word_ref, mask_ref, pos_ref, emb_g_ref, emb_b_ref,
                 wq_ref, wk_ref, wv_ref, wo_ref, wi_ref, wo2_ref,
                 bq_ref, bk_ref, bv_ref, bo_ref, bi_ref, bo2_ref,
                 ln1_g_ref, ln1_b_ref, ln2_g_ref, ln2_b_ref,
                 o_ref):
    """One batch element per grid step: embedding LN + all encoder layers."""
    mask = mask_ref[...]                                            # (1, S) additive
    x = _layernorm(word_ref[...] + pos_ref[...], emb_g_ref[...], emb_b_ref[...])  # (S, H)
    scale = jnp.float32(1.0 / (HEAD_DIM ** 0.5))

    for l in range(N_LAYERS):                       # static unroll (N_LAYERS = 2)
        # ---- self-attention: QKV fused, heads folded into the out-proj accumulator ----
        x_bf = x.astype(MM_DTYPE)
        attn = jnp.zeros_like(x)                                    # (S, H) f32
        for h in range(N_HEADS):                    # static unroll (N_HEADS = 2)
            q = jnp.dot(x_bf, wq_ref[l, h], preferred_element_type=jnp.float32) + bq_ref[l, h]
            k = jnp.dot(x_bf, wk_ref[l, h], preferred_element_type=jnp.float32) + bk_ref[l, h]
            v = jnp.dot(x_bf, wv_ref[l, h], preferred_element_type=jnp.float32) + bv_ref[l, h]
            # Q @ K^T via last-dim contraction (no materialized transpose).
            s = lax.dot_general(q.astype(MM_DTYPE), k.astype(MM_DTYPE),
                                (((1,), (1,)), ((), ())),
                                preferred_element_type=jnp.float32)  # (S, S)
            s = s * scale + mask
            s = s - jnp.max(s, axis=-1, keepdims=True)
            p = jnp.exp(s)
            # approx reciprocal (EUP slot): ~1e-3 rel error vs exact divide.
            p = p * pl.reciprocal(jnp.sum(p, axis=-1, keepdims=True), approx=True)
            ctx = jnp.dot(p.astype(MM_DTYPE), v.astype(MM_DTYPE),
                          preferred_element_type=jnp.float32)        # (S, Dh)
            # Fold this head's context straight into the attention output projection:
            # sum_h ctx_h @ Wo[h]  ==  concat_h(ctx_h) @ Wo   (no concatenate needed).
            attn = attn + jnp.dot(ctx.astype(MM_DTYPE), wo_ref[l, h],
                                  preferred_element_type=jnp.float32)  # (S, H)
        x = _layernorm(attn + bo_ref[l] + x, ln1_g_ref[l], ln1_b_ref[l])

        # ---- FFN: dense + GELU -> dense + residual + LayerNorm (all in VMEM) ----
        hmid = jnp.dot(x.astype(MM_DTYPE), wi_ref[l],
                       preferred_element_type=jnp.float32) + bi_ref[l]   # (S, I) f32
        hmid = _gelu(hmid).astype(MM_DTYPE)          # bf16 before second MXU matmul
        y = jnp.dot(hmid, wo2_ref[l], preferred_element_type=jnp.float32) + bo2_ref[l] + x
        x = _layernorm(y, ln2_g_ref[l], ln2_b_ref[l])

    o_ref[...] = x.astype(o_ref.dtype)


def _const_spec(arr):
    """Grid-invariant operand: full block, constant index map (fetched once)."""
    nd = arr.ndim
    return pl.BlockSpec(arr.shape, lambda b, _n=nd: (0,) * _n)


# ------------------------------ parameter handling ------------------------------
def init_params(key):
    keys = jax.random.split(key, 3 + 4 * N_LAYERS)
    kit = iter(keys)

    def w(shape):
        return jax.random.normal(next(kit), shape, jnp.float32) * 0.02

    params = {
        "word_emb": w((VOCAB, HIDDEN)),
        "pos_emb": w((MAX_POS, HIDDEN)),
        "type_emb": w((TYPE_VOCAB, HIDDEN)),
        "emb_ln_g": jnp.ones((HIDDEN,), jnp.float32),
        "emb_ln_b": jnp.zeros((HIDDEN,), jnp.float32),
        "layers": [],
    }
    for _ in range(N_LAYERS):
        params["layers"].append({
            "wqkv": w((HIDDEN, 3 * HIDDEN)),
            "bqkv": jnp.zeros((3 * HIDDEN,), jnp.float32),
            "wo": w((HIDDEN, HIDDEN)), "bo": jnp.zeros((HIDDEN,), jnp.float32),
            "ln1_g": jnp.ones((HIDDEN,), jnp.float32),
            "ln1_b": jnp.zeros((HIDDEN,), jnp.float32),
            "wi": w((HIDDEN, INTER)), "bi": jnp.zeros((INTER,), jnp.float32),
            "wo2": w((INTER, HIDDEN)), "bo2": jnp.zeros((HIDDEN,), jnp.float32),
            "ln2_g": jnp.ones((HIDDEN,), jnp.float32),
            "ln2_b": jnp.zeros((HIDDEN,), jnp.float32),
        })
    return params


def pack_params(params):
    """One-time repack: bf16 MXU weights, layer-stacked & head-split so the kernel
    indexes layers/heads on leading dims (no lane-dimension slicing in-kernel)."""
    H, NH, Dh, I = HIDDEN, N_HEADS, HEAD_DIM, INTER

    def stack(fn):
        return jnp.stack([fn(lyr) for lyr in params["layers"]], axis=0)

    def split_heads_w(w2d):          # (H, H) -> (NH, H, Dh)
        return w2d.reshape(H, NH, Dh).transpose(1, 0, 2)

    def split_heads_b(b1d):          # (H,) -> (NH, 1, Dh)
        return b1d.reshape(NH, 1, Dh)

    return {
        "word_emb": params["word_emb"],
        "pos_emb": params["pos_emb"],
        "type_emb": params["type_emb"],
        "emb_ln_g": params["emb_ln_g"].reshape(1, H),
        "emb_ln_b": params["emb_ln_b"].reshape(1, H),
        # bf16 MXU weights (pre-cast once)
        "wq": stack(lambda l: split_heads_w(l["wqkv"][:, 0 * H:1 * H])).astype(MM_DTYPE),
        "wk": stack(lambda l: split_heads_w(l["wqkv"][:, 1 * H:2 * H])).astype(MM_DTYPE),
        "wv": stack(lambda l: split_heads_w(l["wqkv"][:, 2 * H:3 * H])).astype(MM_DTYPE),
        "wo": stack(lambda l: l["wo"].reshape(NH, Dh, H)).astype(MM_DTYPE),
        "wi": stack(lambda l: l["wi"]).astype(MM_DTYPE),
        "wo2": stack(lambda l: l["wo2"]).astype(MM_DTYPE),
        # f32 biases / LayerNorm params
        "bq": stack(lambda l: split_heads_b(l["bqkv"][0 * H:1 * H])),
        "bk": stack(lambda l: split_heads_b(l["bqkv"][1 * H:2 * H])),
        "bv": stack(lambda l: split_heads_b(l["bqkv"][2 * H:3 * H])),
        "bo": stack(lambda l: l["bo"].reshape(1, H)),
        "bi": stack(lambda l: l["bi"].reshape(1, I)),
        "bo2": stack(lambda l: l["bo2"].reshape(1, H)),
        "ln1_g": stack(lambda l: l["ln1_g"].reshape(1, H)),
        "ln1_b": stack(lambda l: l["ln1_b"].reshape(1, H)),
        "ln2_g": stack(lambda l: l["ln2_g"].reshape(1, H)),
        "ln2_b": stack(lambda l: l["ln2_b"].reshape(1, H)),
    }


# ----------------------------------- forward -----------------------------------
def bert_embedder_forward(packed, tokens, masks=None):
    """Mirrors BertEmbedder.forward: returns last-hidden-state (B, S, HIDDEN)."""
    B, S = tokens.shape
    if masks is None:
        masks = jnp.ones((B, S), jnp.float32)

    # BERT-style additive attention mask: (1 - m) * -10000, shape (B, 1, S)
    add_mask = ((1.0 - masks.astype(jnp.float32)) * -10000.0).reshape(B, 1, S)

    # Tiny gathers stay in XLA; pos+type add and LayerNorm are fused in-kernel.
    # TODO(synk): fuse the word-embedding row gather via scalar-prefetch to avoid
    # the (B, S, H) temp (negligible at these shapes).
    word = packed["word_emb"][tokens]                                   # (B, S, H) f32
    pos_typ = packed["pos_emb"][:S] + packed["type_emb"][0][None, :]    # (S, H) f32

    consts = [pos_typ, packed["emb_ln_g"], packed["emb_ln_b"],
              packed["wq"], packed["wk"], packed["wv"], packed["wo"],
              packed["wi"], packed["wo2"],
              packed["bq"], packed["bk"], packed["bv"], packed["bo"],
              packed["bi"], packed["bo2"],
              packed["ln1_g"], packed["ln1_b"], packed["ln2_g"], packed["ln2_b"]]

    out = pl.pallas_call(
        _bert_kernel,
        out_shape=jax.ShapeDtypeStruct((B, S, HIDDEN), jnp.float32),
        grid=(B,),
        in_specs=[
            pl.BlockSpec((None, S, HIDDEN), lambda b: (b, 0, 0)),   # this batch's word emb
            pl.BlockSpec((None, 1, S), lambda b: (b, 0, 0)),        # this batch's mask
        ] + [_const_spec(a) for a in consts],
        out_specs=pl.BlockSpec((None, S, HIDDEN), lambda b: (b, 0, 0)),
        compiler_params=pltpu.CompilerParams(
            dimension_semantics=("parallel",),
            vmem_limit_bytes=32 * 1024 * 1024),
    )(word, add_mask, *consts)
    # Note: pooled_output (CLS pooler) is discarded by BertEmbedder, so not computed.
    return out


# ------------------------------------- main -------------------------------------
if __name__ == "__main__":
    key = jax.random.PRNGKey(0)
    pkey, tkey = jax.random.split(key)

    B, S = 2, 8
    params = init_params(pkey)
    packed = pack_params(params)
    tokens = jax.random.randint(tkey, (B, S), 0, VOCAB, dtype=jnp.int32)
    masks = jnp.ones((B, S), jnp.float32).at[1, 6:].set(0.0)  # some padding in batch 1

    out = bert_embedder_forward(packed, tokens, masks)
    out = jax.block_until_ready(out)

    assert out.shape == (B, S, HIDDEN), out.shape
    assert out.dtype == jnp.float32
    assert bool(jnp.all(jnp.isfinite(out)))
    print("KERNEL_OK")
</pallas_src>

<mosaic_0001>
module attributes {stable_mosaic.version = 11 : i64} {
  func.func @_bert_kernel(%arg0: i32, %arg1: memref<1x8x32xf32, #tpu.memory_space<vmem>>, %arg2: memref<1x1x8xf32, #tpu.memory_space<vmem>>, %arg3: memref<8x32xf32, #tpu.memory_space<vmem>>, %arg4: memref<1x32xf32, #tpu.memory_space<vmem>>, %arg5: memref<1x32xf32, #tpu.memory_space<vmem>>, %arg6: memref<2x2x32x16xbf16, #tpu.memory_space<vmem>>, %arg7: memref<2x2x32x16xbf16, #tpu.memory_space<vmem>>, %arg8: memref<2x2x32x16xbf16, #tpu.memory_space<vmem>>, %arg9: memref<2x2x16x32xbf16, #tpu.memory_space<vmem>>, %arg10: memref<2x32x64xbf16, #tpu.memory_space<vmem>>, %arg11: memref<2x64x32xbf16, #tpu.memory_space<vmem>>, %arg12: memref<2x2x1x16xf32, #tpu.memory_space<vmem>>, %arg13: memref<2x2x1x16xf32, #tpu.memory_space<vmem>>, %arg14: memref<2x2x1x16xf32, #tpu.memory_space<vmem>>, %arg15: memref<2x1x32xf32, #tpu.memory_space<vmem>>, %arg16: memref<2x1x64xf32, #tpu.memory_space<vmem>>, %arg17: memref<2x1x32xf32, #tpu.memory_space<vmem>>, %arg18: memref<2x1x32xf32, #tpu.memory_space<vmem>>, %arg19: memref<2x1x32xf32, #tpu.memory_space<vmem>>, %arg20: memref<2x1x32xf32, #tpu.memory_space<vmem>>, %arg21: memref<2x1x32xf32, #tpu.memory_space<vmem>>, %arg22: memref<1x8x32xf32, #tpu.memory_space<vmem>>) attributes {dimension_semantics = [#tpu.dimension_semantics<parallel>], iteration_bounds = array<i64: 2>, scalar_prefetch = 0 : i64, scratch_operands = 0 : i64, tpu.core_type = #tpu.core_type<tc>, window_params = [{transform_indices = @transform_0, window_bounds = array<i64: 1, 8, 32>}, {transform_indices = @transform_1, window_bounds = array<i64: 1, 1, 8>}, {pipeline_mode = #tpu.pipeline_mode<synchronous>, transform_indices = @transform_2, window_bounds = array<i64: 8, 32>}, {pipeline_mode = #tpu.pipeline_mode<synchronous>, transform_indices = @transform_3, window_bounds = array<i64: 1, 32>}, {pipeline_mode = #tpu.pipeline_mode<synchronous>, transform_indices = @transform_4, window_bounds = array<i64: 1, 32>}, {pipeline_mode = #tpu.pipeline_mode<synchronous>, transform_indices = @transform_5, window_bounds = array<i64: 2, 2, 32, 16>}, {pipeline_mode = #tpu.pipeline_mode<synchronous>, transform_indices = @transform_6, window_bounds = array<i64: 2, 2, 32, 16>}, {pipeline_mode = #tpu.pipeline_mode<synchronous>, transform_indices = @transform_7, window_bounds = array<i64: 2, 2, 32, 16>}, {pipeline_mode = #tpu.pipeline_mode<synchronous>, transform_indices = @transform_8, window_bounds = array<i64: 2, 2, 16, 32>}, {pipeline_mode = #tpu.pipeline_mode<synchronous>, transform_indices = @transform_9, window_bounds = array<i64: 2, 32, 64>}, {pipeline_mode = #tpu.pipeline_mode<synchronous>, transform_indices = @transform_10, window_bounds = array<i64: 2, 64, 32>}, {pipeline_mode = #tpu.pipeline_mode<synchronous>, transform_indices = @transform_11, window_bounds = array<i64: 2, 2, 1, 16>}, {pipeline_mode = #tpu.pipeline_mode<synchronous>, transform_indices = @transform_12, window_bounds = array<i64: 2, 2, 1, 16>}, {pipeline_mode = #tpu.pipeline_mode<synchronous>, transform_indices = @transform_13, window_bounds = array<i64: 2, 2, 1, 16>}, {pipeline_mode = #tpu.pipeline_mode<synchronous>, transform_indices = @transform_14, window_bounds = array<i64: 2, 1, 32>}, {pipeline_mode = #tpu.pipeline_mode<synchronous>, transform_indices = @transform_15, window_bounds = array<i64: 2, 1, 64>}, {pipeline_mode = #tpu.pipeline_mode<synchronous>, transform_indices = @transform_16, window_bounds = array<i64: 2, 1, 32>}, {pipeline_mode = #tpu.pipeline_mode<synchronous>, transform_indices = @transform_17, window_bounds = array<i64: 2, 1, 32>}, {pipeline_mode = #tpu.pipeline_mode<synchronous>, transform_indices = @transform_18, window_bounds = array<i64: 2, 1, 32>}, {pipeline_mode = #tpu.pipeline_mode<synchronous>, transform_indices = @transform_19, window_bounds = array<i64: 2, 1, 32>}, {pipeline_mode = #tpu.pipeline_mode<synchronous>, transform_indices = @transform_20, window_bounds = array<i64: 2, 1, 32>}, {transform_indices = @transform_21, window_bounds = array<i64: 1, 8, 32>}]} {
    %c0 = arith.constant 0 : index
    %c0_0 = arith.constant 0 : index
    %c0_1 = arith.constant 0 : index
    %0 = vector.load %arg2[%c0, %c0_0, %c0_1] : memref<1x1x8xf32, #tpu.memory_space<vmem>>, vector<1x1x8xf32>
    %1 = vector.shape_cast %0 : vector<1x1x8xf32> to vector<1x8xf32>
    %c0_2 = arith.constant 0 : index
    %c0_3 = arith.constant 0 : index
    %c0_4 = arith.constant 0 : index
    %2 = vector.load %arg1[%c0_2, %c0_3, %c0_4] : memref<1x8x32xf32, #tpu.memory_space<vmem>>, vector<1x8x32xf32>
    %3 = vector.shape_cast %2 : vector<1x8x32xf32> to vector<8x32xf32>
    %c0_5 = arith.constant 0 : index
    %c0_6 = arith.constant 0 : index
    %4 = vector.load %arg3[%c0_5, %c0_6] : memref<8x32xf32, #tpu.memory_space<vmem>>, vector<8x32xf32>
    %5 = arith.addf %3, %4 : vector<8x32xf32>
    %c0_7 = arith.constant 0 : index
    %c0_8 = arith.constant 0 : index
    %6 = vector.load %arg4[%c0_7, %c0_8] : memref<1x32xf32, #tpu.memory_space<vmem>>, vector<1x32xf32>
    %c0_9 = arith.constant 0 : index
    %c0_10 = arith.constant 0 : index
    %7 = vector.load %arg5[%c0_9, %c0_10] : memref<1x32xf32, #tpu.memory_space<vmem>>, vector<1x32xf32>
    %cst = arith.constant dense<0.000000e+00> : vector<8xf32>
    %8 = vector.multi_reduction <add>, %5, %cst [1] : vector<8x32xf32> to vector<8xf32>
    %9 = vector.shape_cast %8 : vector<8xf32> to vector<8x1xf32>
    %cst_11 = arith.constant 3.200000e+01 : f32
    %10 = vector.broadcast %cst_11 : f32 to vector<8x1xf32>
    %11 = arith.divf %9, %10 : vector<8x1xf32>
    %12 = vector.broadcast %11 : vector<8x1xf32> to vector<8x32xf32>
    %13 = arith.subf %5, %12 : vector<8x32xf32>
    %14 = arith.mulf %13, %13 : vector<8x32xf32>
    %cst_12 = arith.constant dense<0.000000e+00> : vector<8xf32>
    %15 = vector.multi_reduction <add>, %14, %cst_12 [1] : vector<8x32xf32> to vector<8xf32>
    %16 = vector.shape_cast %15 : vector<8xf32> to vector<8x1xf32>
    %cst_13 = arith.constant 3.200000e+01 : f32
    %17 = vector.broadcast %cst_13 : f32 to vector<8x1xf32>
    %18 = arith.divf %16, %17 : vector<8x1xf32>
    %cst_14 = arith.constant 9.99999996E-13 : f32
    %19 = vector.broadcast %cst_14 : f32 to vector<8x1xf32>
    %20 = arith.addf %18, %19 : vector<8x1xf32>
    %21 = math.rsqrt %20 : vector<8x1xf32>
    %22 = vector.broadcast %21 : vector<8x1xf32> to vector<8x32xf32>
    %23 = arith.mulf %13, %22 : vector<8x32xf32>
    %24 = vector.broadcast %6 : vector<1x32xf32> to vector<8x32xf32>
    %25 = arith.mulf %23, %24 : vector<8x32xf32>
    %26 = vector.broadcast %7 : vector<1x32xf32> to vector<8x32xf32>
    %27 = arith.addf %25, %26 : vector<8x32xf32>
    %28 = arith.truncf %27 : vector<8x32xf32> to vector<8x32xbf16>
    %cst_15 = arith.constant 0.000000e+00 : f32
    %29 = vector.broadcast %cst_15 : f32 to vector<8x32xf32>
    %c0_16 = arith.constant 0 : index
    %c0_17 = arith.constant 0 : index
    %c0_18 = arith.constant 0 : index
    %c0_19 = arith.constant 0 : index
    %30 = vector.load %arg6[%c0_16, %c0_17, %c0_18, %c0_19] : memref<2x2x32x16xbf16, #tpu.memory_space<vmem>>, vector<1x1x32x16xbf16>
    %31 = vector.shape_cast %30 : vector<1x1x32x16xbf16> to vector<32x16xbf16>
    %cst_20 = arith.constant dense<0.000000e+00> : vector<8x16xf32>
    %32 = tpu.matmul %28, %31, %cst_20 {dimension_numbers = #tpu.dot_dimension_numbers<[1], [0], [0], [1], [0, 0, 1, 1], [], []>} : vector<8x32xbf16>, vector<32x16xbf16>, vector<8x16xf32> -> vector<8x16xf32>
    %c0_21 = arith.constant 0 : index
    %c0_22 = arith.constant 0 : index
    %c0_23 = arith.constant 0 : index
    %c0_24 = arith.constant 0 : index
    %33 = vector.load %arg12[%c0_21, %c0_22, %c0_23, %c0_24] : memref<2x2x1x16xf32, #tpu.memory_space<vmem>>, vector<1x1x1x16xf32>
    %34 = vector.shape_cast %33 : vector<1x1x1x16xf32> to vector<1x16xf32>
    %35 = vector.broadcast %34 : vector<1x16xf32> to vector<8x16xf32>
    %36 = arith.addf %32, %35 : vector<8x16xf32>
    %c0_25 = arith.constant 0 : index
    %c0_26 = arith.constant 0 : index
    %c0_27 = arith.constant 0 : index
    %c0_28 = arith.constant 0 : index
    %37 = vector.load %arg7[%c0_25, %c0_26, %c0_27, %c0_28] : memref<2x2x32x16xbf16, #tpu.memory_space<vmem>>, vector<1x1x32x16xbf16>
    %38 = vector.shape_cast %37 : vector<1x1x32x16xbf16> to vector<32x16xbf16>
    %cst_29 = arith.constant dense<0.000000e+00> : vector<8x16xf32>
    %39 = tpu.matmul %28, %38, %cst_29 {dimension_numbers = #tpu.dot_dimension_numbers<[1], [0], [0], [1], [0, 0, 1, 1], [], []>} : vector<8x32xbf16>, vector<32x16xbf16>, vector<8x16xf32> -> vector<8x16xf32>
    %c0_30 = arith.constant 0 : index
    %c0_31 = arith.constant 0 : index
    %c0_32 = arith.constant 0 : index
    %c0_33 = arith.constant 0 : index
    %40 = vector.load %arg13[%c0_30, %c0_31, %c0_32, %c0_33] : memref<2x2x1x16xf32, #tpu.memory_space<vmem>>, vector<1x1x1x16xf32>
    %41 = vector.shape_cast %40 : vector<1x1x1x16xf32> to vector<1x16xf32>
    %42 = vector.broadcast %41 : vector<1x16xf32> to vector<8x16xf32>
    %43 = arith.addf %39, %42 : vector<8x16xf32>
    %c0_34 = arith.constant 0 : index
    %c0_35 = arith.constant 0 : index
    %c0_36 = arith.constant 0 : index
    %c0_37 = arith.constant 0 : index
    %44 = vector.load %arg8[%c0_34, %c0_35, %c0_36, %c0_37] : memref<2x2x32x16xbf16, #tpu.memory_space<vmem>>, vector<1x1x32x16xbf16>
    %45 = vector.shape_cast %44 : vector<1x1x32x16xbf16> to vector<32x16xbf16>
    %cst_38 = arith.constant dense<0.000000e+00> : vector<8x16xf32>
    %46 = tpu.matmul %28, %45, %cst_38 {dimension_numbers = #tpu.dot_dimension_numbers<[1], [0], [0], [1], [0, 0, 1, 1], [], []>} : vector<8x32xbf16>, vector<32x16xbf16>, vector<8x16xf32> -> vector<8x16xf32>
    %c0_39 = arith.constant 0 : index
    %c0_40 = arith.constant 0 : index
    %c0_41 = arith.constant 0 : index
    %c0_42 = arith.constant 0 : index
    %47 = vector.load %arg14[%c0_39, %c0_40, %c0_41, %c0_42] : memref<2x2x1x16xf32, #tpu.memory_space<vmem>>, vector<1x1x1x16xf32>
    %48 = vector.shape_cast %47 : vector<1x1x1x16xf32> to vector<1x16xf32>
    %49 = vector.broadcast %48 : vector<1x16xf32> to vector<8x16xf32>
    %50 = arith.addf %46, %49 : vector<8x16xf32>
    %51 = arith.truncf %36 : vector<8x16xf32> to vector<8x16xbf16>
    %52 = arith.truncf %43 : vector<8x16xf32> to vector<8x16xbf16>
    %cst_43 = arith.constant dense<0.000000e+00> : vector<8x8xf32>
    %53 = tpu.matmul %51, %52, %cst_43 {dimension_numbers = #tpu.dot_dimension_numbers<[1], [1], [0], [0], [0, 0, 1, 0], [], []>} : vector<8x16xbf16>, vector<8x16xbf16>, vector<8x8xf32> -> vector<8x8xf32>
    %cst_44 = arith.constant 2.500000e-01 : f32
    %54 = vector.broadcast %cst_44 : f32 to vector<8x8xf32>
    %55 = arith.mulf %53, %54 : vector<8x8xf32>
    %56 = vector.broadcast %1 : vector<1x8xf32> to vector<8x8xf32>
    %57 = arith.addf %55, %56 : vector<8x8xf32>
    %cst_45 = arith.constant dense<0xFF800000> : vector<8xf32>
    %58 = vector.multi_reduction <maximumf>, %57, %cst_45 [1] : vector<8x8xf32> to vector<8xf32>
    %59 = vector.shape_cast %58 : vector<8xf32> to vector<8x1xf32>
    %60 = vector.broadcast %59 : vector<8x1xf32> to vector<8x8xf32>
    %61 = arith.subf %57, %60 : vector<8x8xf32>
    %62 = math.exp %61 : vector<8x8xf32>
    %cst_46 = arith.constant dense<0.000000e+00> : vector<8xf32>
    %63 = vector.multi_reduction <add>, %62, %cst_46 [1] : vector<8x8xf32> to vector<8xf32>
    %64 = vector.shape_cast %63 : vector<8xf32> to vector<8x1xf32>
    %65 = tpu.reciprocal %64 {approx = true} : vector<8x1xf32> -> vector<8x1xf32>
    %66 = vector.broadcast %65 : vector<8x1xf32> to vector<8x8xf32>
    %67 = arith.mulf %62, %66 : vector<8x8xf32>
    %68 = arith.truncf %67 : vector<8x8xf32> to vector<8x8xbf16>
    %69 = arith.truncf %50 : vector<8x16xf32> to vector<8x16xbf16>
    %cst_47 = arith.constant dense<0.000000e+00> : vector<8x16xf32>
    %70 = tpu.matmul %68, %69, %cst_47 {dimension_numbers = #tpu.dot_dimension_numbers<[1], [0], [0], [1], [0, 0, 1, 1], [], []>} : vector<8x8xbf16>, vector<8x16xbf16>, vector<8x16xf32> -> vector<8x16xf32>
    %71 = arith.truncf %70 : vector<8x16xf32> to vector<8x16xbf16>
    %c0_48 = arith.constant 0 : index
    %c0_49 = arith.constant 0 : index
    %c0_50 = arith.constant 0 : index
    %c0_51 = arith.constant 0 : index
    %72 = vector.load %arg9[%c0_48, %c0_49, %c0_50, %c0_51] : memref<2x2x16x32xbf16, #tpu.memory_space<vmem>>, vector<1x1x16x32xbf16>
    %73 = vector.shape_cast %72 : vector<1x1x16x32xbf16> to vector<16x32xbf16>
    %cst_52 = arith.constant dense<0.000000e+00> : vector<8x32xf32>
    %74 = tpu.matmul %71, %73, %cst_52 {dimension_numbers = #tpu.dot_dimension_numbers<[1], [0], [0], [1], [0, 0, 1, 1], [], []>} : vector<8x16xbf16>, vector<16x32xbf16>, vector<8x32xf32> -> vector<8x32xf32>
    %75 = arith.addf %29, %74 : vector<8x32xf32>
    %c0_53 = arith.constant 0 : index
    %c1 = arith.constant 1 : index
    %c0_54 = arith.constant 0 : index
    %c0_55 = arith.constant 0 : index
    %76 = vector.load %arg6[%c0_53, %c1, %c0_54, %c0_55] : memref<2x2x32x16xbf16, #tpu.memory_space<vmem>>, vector<1x1x32x16xbf16>
    %77 = vector.shape_cast %76 : vector<1x1x32x16xbf16> to vector<32x16xbf16>
    %cst_56 = arith.constant dense<0.000000e+00> : vector<8x16xf32>
    %78 = tpu.matmul %28, %77, %cst_56 {dimension_numbers = #tpu.dot_dimension_numbers<[1], [0], [0], [1], [0, 0, 1, 1], [], []>} : vector<8x32xbf16>, vector<32x16xbf16>, vector<8x16xf32> -> vector<8x16xf32>
    %c0_57 = arith.constant 0 : index
    %c1_58 = arith.constant 1 : index
    %c0_59 = arith.constant 0 : index
    %c0_60 = arith.constant 0 : index
    %79 = vector.load %arg12[%c0_57, %c1_58, %c0_59, %c0_60] : memref<2x2x1x16xf32, #tpu.memory_space<vmem>>, vector<1x1x1x16xf32>
    %80 = vector.shape_cast %79 : vector<1x1x1x16xf32> to vector<1x16xf32>
    %81 = vector.broadcast %80 : vector<1x16xf32> to vector<8x16xf32>
    %82 = arith.addf %78, %81 : vector<8x16xf32>
    %c0_61 = arith.constant 0 : index
    %c1_62 = arith.constant 1 : index
    %c0_63 = arith.constant 0 : index
    %c0_64 = arith.constant 0 : index
    %83 = vector.load %arg7[%c0_61, %c1_62, %c0_63, %c0_64] : memref<2x2x32x16xbf16, #tpu.memory_space<vmem>>, vector<1x1x32x16xbf16>
    %84 = vector.shape_cast %83 : vector<1x1x32x16xbf16> to vector<32x16xbf16>
    %cst_65 = arith.constant dense<0.000000e+00> : vector<8x16xf32>
    %85 = tpu.matmul %28, %84, %cst_65 {dimension_numbers = #tpu.dot_dimension_numbers<[1], [0], [0], [1], [0, 0, 1, 1], [], []>} : vector<8x32xbf16>, vector<32x16xbf16>, vector<8x16xf32> -> vector<8x16xf32>
    %c0_66 = arith.constant 0 : index
    %c1_67 = arith.constant 1 : index
    %c0_68 = arith.constant 0 : index
    %c0_69 = arith.constant 0 : index
    %86 = vector.load %arg13[%c0_66, %c1_67, %c0_68, %c0_69] : memref<2x2x1x16xf32, #tpu.memory_space<vmem>>, vector<1x1x1x16xf32>
    %87 = vector.shape_cast %86 : vector<1x1x1x16xf32> to vector<1x16xf32>
    %88 = vector.broadcast %87 : vector<1x16xf32> to vector<8x16xf32>
    %89 = arith.addf %85, %88 : vector<8x16xf32>
    %c0_70 = arith.constant 0 : index
    %c1_71 = arith.constant 1 : index
    %c0_72 = arith.constant 0 : index
    %c0_73 = arith.constant 0 : index
    %90 = vector.load %arg8[%c0_70, %c1_71, %c0_72, %c0_73] : memref<2x2x32x16xbf16, #tpu.memory_space<vmem>>, vector<1x1x32x16xbf16>
    %91 = vector.shape_cast %90 : vector<1x1x32x16xbf16> to vector<32x16xbf16>
    %cst_74 = arith.constant dense<0.000000e+00> : vector<8x16xf32>
    %92 = tpu.matmul %28, %91, %cst_74 {dimension_numbers = #tpu.dot_dimension_numbers<[1], [0], [0], [1], [0, 0, 1, 1], [], []>} : vector<8x32xbf16>, vector<32x16xbf16>, vector<8x16xf32> -> vector<8x16xf32>
    %c0_75 = arith.constant 0 : index
    %c1_76 = arith.constant 1 : index
    %c0_77 = arith.constant 0 : index
    %c0_78 = arith.constant 0 : index
    %93 = vector.load %arg14[%c0_75, %c1_76, %c0_77, %c0_78] : memref<2x2x1x16xf32, #tpu.memory_space<vmem>>, vector<1x1x1x16xf32>
    %94 = vector.shape_cast %93 : vector<1x1x1x16xf32> to vector<1x16xf32>
    %95 = vector.broadcast %94 : vector<1x16xf32> to vector<8x16xf32>
    %96 = arith.addf %92, %95 : vector<8x16xf32>
    %97 = arith.truncf %82 : vector<8x16xf32> to vector<8x16xbf16>
    %98 = arith.truncf %89 : vector<8x16xf32> to vector<8x16xbf16>
    %cst_79 = arith.constant dense<0.000000e+00> : vector<8x8xf32>
    %99 = tpu.matmul %97, %98, %cst_79 {dimension_numbers = #tpu.dot_dimension_numbers<[1], [1], [0], [0], [0, 0, 1, 0], [], []>} : vector<8x16xbf16>, vector<8x16xbf16>, vector<8x8xf32> -> vector<8x8xf32>
    %cst_80 = arith.constant 2.500000e-01 : f32
    %100 = vector.broadcast %cst_80 : f32 to vector<8x8xf32>
    %101 = arith.mulf %99, %100 : vector<8x8xf32>
    %102 = vector.broadcast %1 : vector<1x8xf32> to vector<8x8xf32>
    %103 = arith.addf %101, %102 : vector<8x8xf32>
    %cst_81 = arith.constant dense<0xFF800000> : vector<8xf32>
    %104 = vector.multi_reduction <maximumf>, %103, %cst_81 [1] : vector<8x8xf32> to vector<8xf32>
    %105 = vector.shape_cast %104 : vector<8xf32> to vector<8x1xf32>
    %106 = vector.broadcast %105 : vector<8x1xf32> to vector<8x8xf32>
    %107 = arith.subf %103, %106 : vector<8x8xf32>
    %108 = math.exp %107 : vector<8x8xf32>
    %cst_82 = arith.constant dense<0.000000e+00> : vector<8xf32>
    %109 = vector.multi_reduction <add>, %108, %cst_82 [1] : vector<8x8xf32> to vector<8xf32>
    %110 = vector.shape_cast %109 : vector<8xf32> to vector<8x1xf32>
    %111 = tpu.reciprocal %110 {approx = true} : vector<8x1xf32> -> vector<8x1xf32>
    %112 = vector.broadcast %111 : vector<8x1xf32> to vector<8x8xf32>
    %113 = arith.mulf %108, %112 : vector<8x8xf32>
    %114 = arith.truncf %113 : vector<8x8xf32> to vector<8x8xbf16>
    %115 = arith.truncf %96 : vector<8x16xf32> to vector<8x16xbf16>
    %cst_83 = arith.constant dense<0.000000e+00> : vector<8x16xf32>
    %116 = tpu.matmul %114, %115, %cst_83 {dimension_numbers = #tpu.dot_dimension_numbers<[1], [0], [0], [1], [0, 0, 1, 1], [], []>} : vector<8x8xbf16>, vector<8x16xbf16>, vector<8x16xf32> -> vector<8x16xf32>
    %117 = arith.truncf %116 : vector<8x16xf32> to vector<8x16xbf16>
    %c0_84 = arith.constant 0 : index
    %c1_85 = arith.constant 1 : index
    %c0_86 = arith.constant 0 : index
    %c0_87 = arith.constant 0 : index
    %118 = vector.load %arg9[%c0_84, %c1_85, %c0_86, %c0_87] : memref<2x2x16x32xbf16, #tpu.memory_space<vmem>>, vector<1x1x16x32xbf16>
    %119 = vector.shape_cast %118 : vector<1x1x16x32xbf16> to vector<16x32xbf16>
    %cst_88 = arith.constant dense<0.000000e+00> : vector<8x32xf32>
    %120 = tpu.matmul %117, %119, %cst_88 {dimension_numbers = #tpu.dot_dimension_numbers<[1], [0], [0], [1], [0, 0, 1, 1], [], []>} : vector<8x16xbf16>, vector<16x32xbf16>, vector<8x32xf32> -> vector<8x32xf32>
    %121 = arith.addf %75, %120 : vector<8x32xf32>
    %c0_89 = arith.constant 0 : index
    %c0_90 = arith.constant 0 : index
    %c0_91 = arith.constant 0 : index
    %122 = vector.load %arg15[%c0_89, %c0_90, %c0_91] : memref<2x1x32xf32, #tpu.memory_space<vmem>>, vector<1x1x32xf32>
    %123 = vector.shape_cast %122 : vector<1x1x32xf32> to vector<1x32xf32>
    %124 = vector.broadcast %123 : vector<1x32xf32> to vector<8x32xf32>
    %125 = arith.addf %121, %124 : vector<8x32xf32>
    %126 = arith.addf %125, %27 : vector<8x32xf32>
    %c0_92 = arith.constant 0 : index
    %c0_93 = arith.constant 0 : index
    %c0_94 = arith.constant 0 : index
    %127 = vector.load %arg18[%c0_92, %c0_93, %c0_94] : memref<2x1x32xf32, #tpu.memory_space<vmem>>, vector<1x1x32xf32>
    %128 = vector.shape_cast %127 : vector<1x1x32xf32> to vector<1x32xf32>
    %c0_95 = arith.constant 0 : index
    %c0_96 = arith.constant 0 : index
    %c0_97 = arith.constant 0 : index
    %129 = vector.load %arg19[%c0_95, %c0_96, %c0_97] : memref<2x1x32xf32, #tpu.memory_space<vmem>>, vector<1x1x32xf32>
    %130 = vector.shape_cast %129 : vector<1x1x32xf32> to vector<1x32xf32>
    %cst_98 = arith.constant dense<0.000000e+00> : vector<8xf32>
    %131 = vector.multi_reduction <add>, %126, %cst_98 [1] : vector<8x32xf32> to vector<8xf32>
    %132 = vector.shape_cast %131 : vector<8xf32> to vector<8x1xf32>
    %cst_99 = arith.constant 3.200000e+01 : f32
    %133 = vector.broadcast %cst_99 : f32 to vector<8x1xf32>
    %134 = arith.divf %132, %133 : vector<8x1xf32>
    %135 = vector.broadcast %134 : vector<8x1xf32> to vector<8x32xf32>
    %136 = arith.subf %126, %135 : vector<8x32xf32>
    %137 = arith.mulf %136, %136 : vector<8x32xf32>
    %cst_100 = arith.constant dense<0.000000e+00> : vector<8xf32>
    %138 = vector.multi_reduction <add>, %137, %cst_100 [1] : vector<8x32xf32> to vector<8xf32>
    %139 = vector.shape_cast %138 : vector<8xf32> to vector<8x1xf32>
    %cst_101 = arith.constant 3.200000e+01 : f32
    %140 = vector.broadcast %cst_101 : f32 to vector<8x1xf32>
    %141 = arith.divf %139, %140 : vector<8x1xf32>
    %cst_102 = arith.constant 9.99999996E-13 : f32
    %142 = vector.broadcast %cst_102 : f32 to vector<8x1xf32>
    %143 = arith.addf %141, %142 : vector<8x1xf32>
    %144 = math.rsqrt %143 : vector<8x1xf32>
    %145 = vector.broadcast %144 : vector<8x1xf32> to vector<8x32xf32>
    %146 = arith.mulf %136, %145 : vector<8x32xf32>
    %147 = vector.broadcast %128 : vector<1x32xf32> to vector<8x32xf32>
    %148 = arith.mulf %146, %147 : vector<8x32xf32>
    %149 = vector.broadcast %130 : vector<1x32xf32> to vector<8x32xf32>
    %150 = arith.addf %148, %149 : vector<8x32xf32>
    %151 = arith.truncf %150 : vector<8x32xf32> to vector<8x32xbf16>
    %c0_103 = arith.constant 0 : index
    %c0_104 = arith.constant 0 : index
    %c0_105 = arith.constant 0 : index
    %152 = vector.load %arg10[%c0_103, %c0_104, %c0_105] : memref<2x32x64xbf16, #tpu.memory_space<vmem>>, vector<1x32x64xbf16>
    %153 = vector.shape_cast %152 : vector<1x32x64xbf16> to vector<32x64xbf16>
    %cst_106 = arith.constant dense<0.000000e+00> : vector<8x64xf32>
    %154 = tpu.matmul %151, %153, %cst_106 {dimension_numbers = #tpu.dot_dimension_numbers<[1], [0], [0], [1], [0, 0, 1, 1], [], []>} : vector<8x32xbf16>, vector<32x64xbf16>, vector<8x64xf32> -> vector<8x64xf32>
    %c0_107 = arith.constant 0 : index
    %c0_108 = arith.constant 0 : index
    %c0_109 = arith.constant 0 : index
    %155 = vector.load %arg16[%c0_107, %c0_108, %c0_109] : memref<2x1x64xf32, #tpu.memory_space<vmem>>, vector<1x1x64xf32>
    %156 = vector.shape_cast %155 : vector<1x1x64xf32> to vector<1x64xf32>
    %157 = vector.broadcast %156 : vector<1x64xf32> to vector<8x64xf32>
    %158 = arith.addf %154, %157 : vector<8x64xf32>
    %cst_110 = arith.constant 5.000000e-01 : f32
    %159 = vector.broadcast %cst_110 : f32 to vector<8x64xf32>
    %160 = arith.mulf %159, %158 : vector<8x64xf32>
    %cst_111 = arith.constant 4.471500e-02 : f32
    %161 = vector.broadcast %cst_111 : f32 to vector<8x64xf32>
    %162 = arith.mulf %161, %158 : vector<8x64xf32>
    %163 = arith.mulf %162, %158 : vector<8x64xf32>
    %164 = arith.mulf %163, %158 : vector<8x64xf32>
    %165 = arith.addf %158, %164 : vector<8x64xf32>
    %cst_112 = arith.constant 0.797884583 : f32
    %166 = vector.broadcast %cst_112 : f32 to vector<8x64xf32>
    %167 = arith.mulf %166, %165 : vector<8x64xf32>
    %168 = math.tanh %167 : vector<8x64xf32>
    %cst_113 = arith.constant 1.000000e+00 : f32
    %169 = vector.broadcast %cst_113 : f32 to vector<8x64xf32>
    %170 = arith.addf %169, %168 : vector<8x64xf32>
    %171 = arith.mulf %160, %170 : vector<8x64xf32>
    %172 = arith.truncf %171 : vector<8x64xf32> to vector<8x64xbf16>
    %c0_114 = arith.constant 0 : index
    %c0_115 = arith.constant 0 : index
    %c0_116 = arith.constant 0 : index
    %173 = vector.load %arg11[%c0_114, %c0_115, %c0_116] : memref<2x64x32xbf16, #tpu.memory_space<vmem>>, vector<1x64x32xbf16>
    %174 = vector.shape_cast %173 : vector<1x64x32xbf16> to vector<64x32xbf16>
    %cst_117 = arith.constant dense<0.000000e+00> : vector<8x32xf32>
    %175 = tpu.matmul %172, %174, %cst_117 {dimension_numbers = #tpu.dot_dimension_numbers<[1], [0], [0], [1], [0, 0, 1, 1], [], []>} : vector<8x64xbf16>, vector<64x32xbf16>, vector<8x32xf32> -> vector<8x32xf32>
    %c0_118 = arith.constant 0 : index
    %c0_119 = arith.constant 0 : index
    %c0_120 = arith.constant 0 : index
    %176 = vector.load %arg17[%c0_118, %c0_119, %c0_120] : memref<2x1x32xf32, #tpu.memory_space<vmem>>, vector<1x1x32xf32>
    %177 = vector.shape_cast %176 : vector<1x1x32xf32> to vector<1x32xf32>
    %178 = vector.broadcast %177 : vector<1x32xf32> to vector<8x32xf32>
    %179 = arith.addf %175, %178 : vector<8x32xf32>
    %180 = arith.addf %179, %150 : vector<8x32xf32>
    %c0_121 = arith.constant 0 : index
    %c0_122 = arith.constant 0 : index
    %c0_123 = arith.constant 0 : index
    %181 = vector.load %arg20[%c0_121, %c0_122, %c0_123] : memref<2x1x32xf32, #tpu.memory_space<vmem>>, vector<1x1x32xf32>
    %182 = vector.shape_cast %181 : vector<1x1x32xf32> to vector<1x32xf32>
    %c0_124 = arith.constant 0 : index
    %c0_125 = arith.constant 0 : index
    %c0_126 = arith.constant 0 : index
    %183 = vector.load %arg21[%c0_124, %c0_125, %c0_126] : memref<2x1x32xf32, #tpu.memory_space<vmem>>, vector<1x1x32xf32>
    %184 = vector.shape_cast %183 : vector<1x1x32xf32> to vector<1x32xf32>
    %cst_127 = arith.constant dense<0.000000e+00> : vector<8xf32>
    %185 = vector.multi_reduction <add>, %180, %cst_127 [1] : vector<8x32xf32> to vector<8xf32>
    %186 = vector.shape_cast %185 : vector<8xf32> to vector<8x1xf32>
    %cst_128 = arith.constant 3.200000e+01 : f32
    %187 = vector.broadcast %cst_128 : f32 to vector<8x1xf32>
    %188 = arith.divf %186, %187 : vector<8x1xf32>
    %189 = vector.broadcast %188 : vector<8x1xf32> to vector<8x32xf32>
    %190 = arith.subf %180, %189 : vector<8x32xf32>
    %191 = arith.mulf %190, %190 : vector<8x32xf32>
    %cst_129 = arith.constant dense<0.000000e+00> : vector<8xf32>
    %192 = vector.multi_reduction <add>, %191, %cst_129 [1] : vector<8x32xf32> to vector<8xf32>
    %193 = vector.shape_cast %192 : vector<8xf32> to vector<8x1xf32>
    %cst_130 = arith.constant 3.200000e+01 : f32
    %194 = vector.broadcast %cst_130 : f32 to vector<8x1xf32>
    %195 = arith.divf %193, %194 : vector<8x1xf32>
    %cst_131 = arith.constant 9.99999996E-13 : f32
    %196 = vector.broadcast %cst_131 : f32 to vector<8x1xf32>
    %197 = arith.addf %195, %196 : vector<8x1xf32>
    %198 = math.rsqrt %197 : vector<8x1xf32>
    %199 = vector.broadcast %198 : vector<8x1xf32> to vector<8x32xf32>
    %200 = arith.mulf %190, %199 : vector<8x32xf32>
    %201 = vector.broadcast %182 : vector<1x32xf32> to vector<8x32xf32>
    %202 = arith.mulf %200, %201 : vector<8x32xf32>
    %203 = vector.broadcast %184 : vector<1x32xf32> to vector<8x32xf32>
    %204 = arith.addf %202, %203 : vector<8x32xf32>
    %205 = arith.truncf %204 : vector<8x32xf32> to vector<8x32xbf16>
    %cst_132 = arith.constant 0.000000e+00 : f32
    %206 = vector.broadcast %cst_132 : f32 to vector<8x32xf32>
    %c1_133 = arith.constant 1 : index
    %c0_134 = arith.constant 0 : index
    %c0_135 = arith.constant 0 : index
    %c0_136 = arith.constant 0 : index
    %207 = vector.load %arg6[%c1_133, %c0_134, %c0_135, %c0_136] : memref<2x2x32x16xbf16, #tpu.memory_space<vmem>>, vector<1x1x32x16xbf16>
    %208 = vector.shape_cast %207 : vector<1x1x32x16xbf16> to vector<32x16xbf16>
    %cst_137 = arith.constant dense<0.000000e+00> : vector<8x16xf32>
    %209 = tpu.matmul %205, %208, %cst_137 {dimension_numbers = #tpu.dot_dimension_numbers<[1], [0], [0], [1], [0, 0, 1, 1], [], []>} : vector<8x32xbf16>, vector<32x16xbf16>, vector<8x16xf32> -> vector<8x16xf32>
    %c1_138 = arith.constant 1 : index
    %c0_139 = arith.constant 0 : index
    %c0_140 = arith.constant 0 : index
    %c0_141 = arith.constant 0 : index
    %210 = vector.load %arg12[%c1_138, %c0_139, %c0_140, %c0_141] : memref<2x2x1x16xf32, #tpu.memory_space<vmem>>, vector<1x1x1x16xf32>
    %211 = vector.shape_cast %210 : vector<1x1x1x16xf32> to vector<1x16xf32>
    %212 = vector.broadcast %211 : vector<1x16xf32> to vector<8x16xf32>
    %213 = arith.addf %209, %212 : vector<8x16xf32>
    %c1_142 = arith.constant 1 : index
    %c0_143 = arith.constant 0 : index
    %c0_144 = arith.constant 0 : index
    %c0_145 = arith.constant 0 : index
    %214 = vector.load %arg7[%c1_142, %c0_143, %c0_144, %c0_145] : memref<2x2x32x16xbf16, #tpu.memory_space<vmem>>, vector<1x1x32x16xbf16>
    %215 = vector.shape_cast %214 : vector<1x1x32x16xbf16> to vector<32x16xbf16>
    %cst_146 = arith.constant dense<0.000000e+00> : vector<8x16xf32>
    %216 = tpu.matmul %205, %215, %cst_146 {dimension_numbers = #tpu.dot_dimension_numbers<[1], [0], [0], [1], [0, 0, 1, 1], [], []>} : vector<8x32xbf16>, vector<32x16xbf16>, vector<8x16xf32> -> vector<8x16xf32>
    %c1_147 = arith.constant 1 : index
    %c0_148 = arith.constant 0 : index
    %c0_149 = arith.constant 0 : index
    %c0_150 = arith.constant 0 : index
    %217 = vector.load %arg13[%c1_147, %c0_148, %c0_149, %c0_150] : memref<2x2x1x16xf32, #tpu.memory_space<vmem>>, vector<1x1x1x16xf32>
    %218 = vector.shape_cast %217 : vector<1x1x1x16xf32> to vector<1x16xf32>
    %219 = vector.broadcast %218 : vector<1x16xf32> to vector<8x16xf32>
    %220 = arith.addf %216, %219 : vector<8x16xf32>
    %c1_151 = arith.constant 1 : index
    %c0_152 = arith.constant 0 : index
    %c0_153 = arith.constant 0 : index
    %c0_154 = arith.constant 0 : index
    %221 = vector.load %arg8[%c1_151, %c0_152, %c0_153, %c0_154] : memref<2x2x32x16xbf16, #tpu.memory_space<vmem>>, vector<1x1x32x16xbf16>
    %222 = vector.shape_cast %221 : vector<1x1x32x16xbf16> to vector<32x16xbf16>
    %cst_155 = arith.constant dense<0.000000e+00> : vector<8x16xf32>
    %223 = tpu.matmul %205, %222, %cst_155 {dimension_numbers = #tpu.dot_dimension_numbers<[1], [0], [0], [1], [0, 0, 1, 1], [], []>} : vector<8x32xbf16>, vector<32x16xbf16>, vector<8x16xf32> -> vector<8x16xf32>
    %c1_156 = arith.constant 1 : index
    %c0_157 = arith.constant 0 : index
    %c0_158 = arith.constant 0 : index
    %c0_159 = arith.constant 0 : index
    %224 = vector.load %arg14[%c1_156, %c0_157, %c0_158, %c0_159] : memref<2x2x1x16xf32, #tpu.memory_space<vmem>>, vector<1x1x1x16xf32>
    %225 = vector.shape_cast %224 : vector<1x1x1x16xf32> to vector<1x16xf32>
    %226 = vector.broadcast %225 : vector<1x16xf32> to vector<8x16xf32>
    %227 = arith.addf %223, %226 : vector<8x16xf32>
    %228 = arith.truncf %213 : vector<8x16xf32> to vector<8x16xbf16>
    %229 = arith.truncf %220 : vector<8x16xf32> to vector<8x16xbf16>
    %cst_160 = arith.constant dense<0.000000e+00> : vector<8x8xf32>
    %230 = tpu.matmul %228, %229, %cst_160 {dimension_numbers = #tpu.dot_dimension_numbers<[1], [1], [0], [0], [0, 0, 1, 0], [], []>} : vector<8x16xbf16>, vector<8x16xbf16>, vector<8x8xf32> -> vector<8x8xf32>
    %cst_161 = arith.constant 2.500000e-01 : f32
    %231 = vector.broadcast %cst_161 : f32 to vector<8x8xf32>
    %232 = arith.mulf %230, %231 : vector<8x8xf32>
    %233 = vector.broadcast %1 : vector<1x8xf32> to vector<8x8xf32>
    %234 = arith.addf %232, %233 : vector<8x8xf32>
    %cst_162 = arith.constant dense<0xFF800000> : vector<8xf32>
    %235 = vector.multi_reduction <maximumf>, %234, %cst_162 [1] : vector<8x8xf32> to vector<8xf32>
    %236 = vector.shape_cast %235 : vector<8xf32> to vector<8x1xf32>
    %237 = vector.broadcast %236 : vector<8x1xf32> to vector<8x8xf32>
    %238 = arith.subf %234, %237 : vector<8x8xf32>
    %239 = math.exp %238 : vector<8x8xf32>
    %cst_163 = arith.constant dense<0.000000e+00> : vector<8xf32>
    %240 = vector.multi_reduction <add>, %239, %cst_163 [1] : vector<8x8xf32> to vector<8xf32>
    %241 = vector.shape_cast %240 : vector<8xf32> to vector<8x1xf32>
    %242 = tpu.reciprocal %241 {approx = true} : vector<8x1xf32> -> vector<8x1xf32>
    %243 = vector.broadcast %242 : vector<8x1xf32> to vector<8x8xf32>
    %244 = arith.mulf %239, %243 : vector<8x8xf32>
    %245 = arith.truncf %244 : vector<8x8xf32> to vector<8x8xbf16>
    %246 = arith.truncf %227 : vector<8x16xf32> to vector<8x16xbf16>
    %cst_164 = arith.constant dense<0.000000e+00> : vector<8x16xf32>
    %247 = tpu.matmul %245, %246, %cst_164 {dimension_numbers = #tpu.dot_dimension_numbers<[1], [0], [0], [1], [0, 0, 1, 1], [], []>} : vector<8x8xbf16>, vector<8x16xbf16>, vector<8x16xf32> -> vector<8x16xf32>
    %248 = arith.truncf %247 : vector<8x16xf32> to vector<8x16xbf16>
    %c1_165 = arith.constant 1 : index
    %c0_166 = arith.constant 0 : index
    %c0_167 = arith.constant 0 : index
    %c0_168 = arith.constant 0 : index
    %249 = vector.load %arg9[%c1_165, %c0_166, %c0_167, %c0_168] : memref<2x2x16x32xbf16, #tpu.memory_space<vmem>>, vector<1x1x16x32xbf16>
    %250 = vector.shape_cast %249 : vector<1x1x16x32xbf16> to vector<16x32xbf16>
    %cst_169 = arith.constant dense<0.000000e+00> : vector<8x32xf32>
    %251 = tpu.matmul %248, %250, %cst_169 {dimension_numbers = #tpu.dot_dimension_numbers<[1], [0], [0], [1], [0, 0, 1, 1], [], []>} : vector<8x16xbf16>, vector<16x32xbf16>, vector<8x32xf32> -> vector<8x32xf32>
    %252 = arith.addf %206, %251 : vector<8x32xf32>
    %c1_170 = arith.constant 1 : index
    %c1_171 = arith.constant 1 : index
    %c0_172 = arith.constant 0 : index
    %c0_173 = arith.constant 0 : index
    %253 = vector.load %arg6[%c1_170, %c1_171, %c0_172, %c0_173] : memref<2x2x32x16xbf16, #tpu.memory_space<vmem>>, vector<1x1x32x16xbf16>
    %254 = vector.shape_cast %253 : vector<1x1x32x16xbf16> to vector<32x16xbf16>
    %cst_174 = arith.constant dense<0.000000e+00> : vector<8x16xf32>
    %255 = tpu.matmul %205, %254, %cst_174 {dimension_numbers = #tpu.dot_dimension_numbers<[1], [0], [0], [1], [0, 0, 1, 1], [], []>} : vector<8x32xbf16>, vector<32x16xbf16>, vector<8x16xf32> -> vector<8x16xf32>
    %c1_175 = arith.constant 1 : index
    %c1_176 = arith.constant 1 : index
    %c0_177 = arith.constant 0 : index
    %c0_178 = arith.constant 0 : index
    %256 = vector.load %arg12[%c1_175, %c1_176, %c0_177, %c0_178] : memref<2x2x1x16xf32, #tpu.memory_space<vmem>>, vector<1x1x1x16xf32>
    %257 = vector.shape_cast %256 : vector<1x1x1x16xf32> to vector<1x16xf32>
    %258 = vector.broadcast %257 : vector<1x16xf32> to vector<8x16xf32>
    %259 = arith.addf %255, %258 : vector<8x16xf32>
    %c1_179 = arith.constant 1 : index
    %c1_180 = arith.constant 1 : index
    %c0_181 = arith.constant 0 : index
    %c0_182 = arith.constant 0 : index
    %260 = vector.load %arg7[%c1_179, %c1_180, %c0_181, %c0_182] : memref<2x2x32x16xbf16, #tpu.memory_space<vmem>>, vector<1x1x32x16xbf16>
    %261 = vector.shape_cast %260 : vector<1x1x32x16xbf16> to vector<32x16xbf16>
    %cst_183 = arith.constant dense<0.000000e+00> : vector<8x16xf32>
    %262 = tpu.matmul %205, %261, %cst_183 {dimension_numbers = #tpu.dot_dimension_numbers<[1], [0], [0], [1], [0, 0, 1, 1], [], []>} : vector<8x32xbf16>, vector<32x16xbf16>, vector<8x16xf32> -> vector<8x16xf32>
    %c1_184 = arith.constant 1 : index
    %c1_185 = arith.constant 1 : index
    %c0_186 = arith.constant 0 : index
    %c0_187 = arith.constant 0 : index
    %263 = vector.load %arg13[%c1_184, %c1_185, %c0_186, %c0_187] : memref<2x2x1x16xf32, #tpu.memory_space<vmem>>, vector<1x1x1x16xf32>
    %264 = vector.shape_cast %263 : vector<1x1x1x16xf32> to vector<1x16xf32>
    %265 = vector.broadcast %264 : vector<1x16xf32> to vector<8x16xf32>
    %266 = arith.addf %262, %265 : vector<8x16xf32>
    %c1_188 = arith.constant 1 : index
    %c1_189 = arith.constant 1 : index
    %c0_190 = arith.constant 0 : index
    %c0_191 = arith.constant 0 : index
    %267 = vector.load %arg8[%c1_188, %c1_189, %c0_190, %c0_191] : memref<2x2x32x16xbf16, #tpu.memory_space<vmem>>, vector<1x1x32x16xbf16>
    %268 = vector.shape_cast %267 : vector<1x1x32x16xbf16> to vector<32x16xbf16>
    %cst_192 = arith.constant dense<0.000000e+00> : vector<8x16xf32>
    %269 = tpu.matmul %205, %268, %cst_192 {dimension_numbers = #tpu.dot_dimension_numbers<[1], [0], [0], [1], [0, 0, 1, 1], [], []>} : vector<8x32xbf16>, vector<32x16xbf16>, vector<8x16xf32> -> vector<8x16xf32>
    %c1_193 = arith.constant 1 : index
    %c1_194 = arith.constant 1 : index
    %c0_195 = arith.constant 0 : index
    %c0_196 = arith.constant 0 : index
    %270 = vector.load %arg14[%c1_193, %c1_194, %c0_195, %c0_196] : memref<2x2x1x16xf32, #tpu.memory_space<vmem>>, vector<1x1x1x16xf32>
    %271 = vector.shape_cast %270 : vector<1x1x1x16xf32> to vector<1x16xf32>
    %272 = vector.broadcast %271 : vector<1x16xf32> to vector<8x16xf32>
    %273 = arith.addf %269, %272 : vector<8x16xf32>
    %274 = arith.truncf %259 : vector<8x16xf32> to vector<8x16xbf16>
    %275 = arith.truncf %266 : vector<8x16xf32> to vector<8x16xbf16>
    %cst_197 = arith.constant dense<0.000000e+00> : vector<8x8xf32>
    %276 = tpu.matmul %274, %275, %cst_197 {dimension_numbers = #tpu.dot_dimension_numbers<[1], [1], [0], [0], [0, 0, 1, 0], [], []>} : vector<8x16xbf16>, vector<8x16xbf16>, vector<8x8xf32> -> vector<8x8xf32>
    %cst_198 = arith.constant 2.500000e-01 : f32
    %277 = vector.broadcast %cst_198 : f32 to vector<8x8xf32>
    %278 = arith.mulf %276, %277 : vector<8x8xf32>
    %279 = vector.broadcast %1 : vector<1x8xf32> to vector<8x8xf32>
    %280 = arith.addf %278, %279 : vector<8x8xf32>
    %cst_199 = arith.constant dense<0xFF800000> : vector<8xf32>
    %281 = vector.multi_reduction <maximumf>, %280, %cst_199 [1] : vector<8x8xf32> to vector<8xf32>
    %282 = vector.shape_cast %281 : vector<8xf32> to vector<8x1xf32>
    %283 = vector.broadcast %282 : vector<8x1xf32> to vector<8x8xf32>
    %284 = arith.subf %280, %283 : vector<8x8xf32>
    %285 = math.exp %284 : vector<8x8xf32>
    %cst_200 = arith.constant dense<0.000000e+00> : vector<8xf32>
    %286 = vector.multi_reduction <add>, %285, %cst_200 [1] : vector<8x8xf32> to vector<8xf32>
    %287 = vector.shape_cast %286 : vector<8xf32> to vector<8x1xf32>
    %288 = tpu.reciprocal %287 {approx = true} : vector<8x1xf32> -> vector<8x1xf32>
    %289 = vector.broadcast %288 : vector<8x1xf32> to vector<8x8xf32>
    %290 = arith.mulf %285, %289 : vector<8x8xf32>
    %291 = arith.truncf %290 : vector<8x8xf32> to vector<8x8xbf16>
    %292 = arith.truncf %273 : vector<8x16xf32> to vector<8x16xbf16>
    %cst_201 = arith.constant dense<0.000000e+00> : vector<8x16xf32>
    %293 = tpu.matmul %291, %292, %cst_201 {dimension_numbers = #tpu.dot_dimension_numbers<[1], [0], [0], [1], [0, 0, 1, 1], [], []>} : vector<8x8xbf16>, vector<8x16xbf16>, vector<8x16xf32> -> vector<8x16xf32>
    %294 = arith.truncf %293 : vector<8x16xf32> to vector<8x16xbf16>
    %c1_202 = arith.constant 1 : index
    %c1_203 = arith.constant 1 : index
    %c0_204 = arith.constant 0 : index
    %c0_205 = arith.constant 0 : index
    %295 = vector.load %arg9[%c1_202, %c1_203, %c0_204, %c0_205] : memref<2x2x16x32xbf16, #tpu.memory_space<vmem>>, vector<1x1x16x32xbf16>
    %296 = vector.shape_cast %295 : vector<1x1x16x32xbf16> to vector<16x32xbf16>
    %cst_206 = arith.constant dense<0.000000e+00> : vector<8x32xf32>
    %297 = tpu.matmul %294, %296, %cst_206 {dimension_numbers = #tpu.dot_dimension_numbers<[1], [0], [0], [1], [0, 0, 1, 1], [], []>} : vector<8x16xbf16>, vector<16x32xbf16>, vector<8x32xf32> -> vector<8x32xf32>
    %298 = arith.addf %252, %297 : vector<8x32xf32>
    %c1_207 = arith.constant 1 : index
    %c0_208 = arith.constant 0 : index
    %c0_209 = arith.constant 0 : index
    %299 = vector.load %arg15[%c1_207, %c0_208, %c0_209] : memref<2x1x32xf32, #tpu.memory_space<vmem>>, vector<1x1x32xf32>
    %300 = vector.shape_cast %299 : vector<1x1x32xf32> to vector<1x32xf32>
    %301 = vector.broadcast %300 : vector<1x32xf32> to vector<8x32xf32>
    %302 = arith.addf %298, %301 : vector<8x32xf32>
    %303 = arith.addf %302, %204 : vector<8x32xf32>
    %c1_210 = arith.constant 1 : index
    %c0_211 = arith.constant 0 : index
    %c0_212 = arith.constant 0 : index
    %304 = vector.load %arg18[%c1_210, %c0_211, %c0_212] : memref<2x1x32xf32, #tpu.memory_space<vmem>>, vector<1x1x32xf32>
    %305 = vector.shape_cast %304 : vector<1x1x32xf32> to vector<1x32xf32>
    %c1_213 = arith.constant 1 : index
    %c0_214 = arith.constant 0 : index
    %c0_215 = arith.constant 0 : index
    %306 = vector.load %arg19[%c1_213, %c0_214, %c0_215] : memref<2x1x32xf32, #tpu.memory_space<vmem>>, vector<1x1x32xf32>
    %307 = vector.shape_cast %306 : vector<1x1x32xf32> to vector<1x32xf32>
    %cst_216 = arith.constant dense<0.000000e+00> : vector<8xf32>
    %308 = vector.multi_reduction <add>, %303, %cst_216 [1] : vector<8x32xf32> to vector<8xf32>
    %309 = vector.shape_cast %308 : vector<8xf32> to vector<8x1xf32>
    %cst_217 = arith.constant 3.200000e+01 : f32
    %310 = vector.broadcast %cst_217 : f32 to vector<8x1xf32>
    %311 = arith.divf %309, %310 : vector<8x1xf32>
    %312 = vector.broadcast %311 : vector<8x1xf32> to vector<8x32xf32>
    %313 = arith.subf %303, %312 : vector<8x32xf32>
    %314 = arith.mulf %313, %313 : vector<8x32xf32>
    %cst_218 = arith.constant dense<0.000000e+00> : vector<8xf32>
    %315 = vector.multi_reduction <add>, %314, %cst_218 [1] : vector<8x32xf32> to vector<8xf32>
    %316 = vector.shape_cast %315 : vector<8xf32> to vector<8x1xf32>
    %cst_219 = arith.constant 3.200000e+01 : f32
    %317 = vector.broadcast %cst_219 : f32 to vector<8x1xf32>
    %318 = arith.divf %316, %317 : vector<8x1xf32>
    %cst_220 = arith.constant 9.99999996E-13 : f32
    %319 = vector.broadcast %cst_220 : f32 to vector<8x1xf32>
    %320 = arith.addf %318, %319 : vector<8x1xf32>
    %321 = math.rsqrt %320 : vector<8x1xf32>
    %322 = vector.broadcast %321 : vector<8x1xf32> to vector<8x32xf32>
    %323 = arith.mulf %313, %322 : vector<8x32xf32>
    %324 = vector.broadcast %305 : vector<1x32xf32> to vector<8x32xf32>
    %325 = arith.mulf %323, %324 : vector<8x32xf32>
    %326 = vector.broadcast %307 : vector<1x32xf32> to vector<8x32xf32>
    %327 = arith.addf %325, %326 : vector<8x32xf32>
    %328 = arith.truncf %327 : vector<8x32xf32> to vector<8x32xbf16>
    %c1_221 = arith.constant 1 : index
    %c0_222 = arith.constant 0 : index
    %c0_223 = arith.constant 0 : index
    %329 = vector.load %arg10[%c1_221, %c0_222, %c0_223] : memref<2x32x64xbf16, #tpu.memory_space<vmem>>, vector<1x32x64xbf16>
    %330 = vector.shape_cast %329 : vector<1x32x64xbf16> to vector<32x64xbf16>
    %cst_224 = arith.constant dense<0.000000e+00> : vector<8x64xf32>
    %331 = tpu.matmul %328, %330, %cst_224 {dimension_numbers = #tpu.dot_dimension_numbers<[1], [0], [0], [1], [0, 0, 1, 1], [], []>} : vector<8x32xbf16>, vector<32x64xbf16>, vector<8x64xf32> -> vector<8x64xf32>
    %c1_225 = arith.constant 1 : index
    %c0_226 = arith.constant 0 : index
    %c0_227 = arith.constant 0 : index
    %332 = vector.load %arg16[%c1_225, %c0_226, %c0_227] : memref<2x1x64xf32, #tpu.memory_space<vmem>>, vector<1x1x64xf32>
    %333 = vector.shape_cast %332 : vector<1x1x64xf32> to vector<1x64xf32>
    %334 = vector.broadcast %333 : vector<1x64xf32> to vector<8x64xf32>
    %335 = arith.addf %331, %334 : vector<8x64xf32>
    %cst_228 = arith.constant 5.000000e-01 : f32
    %336 = vector.broadcast %cst_228 : f32 to vector<8x64xf32>
    %337 = arith.mulf %336, %335 : vector<8x64xf32>
    %cst_229 = arith.constant 4.471500e-02 : f32
    %338 = vector.broadcast %cst_229 : f32 to vector<8x64xf32>
    %339 = arith.mulf %338, %335 : vector<8x64xf32>
    %340 = arith.mulf %339, %335 : vector<8x64xf32>
    %341 = arith.mulf %340, %335 : vector<8x64xf32>
    %342 = arith.addf %335, %341 : vector<8x64xf32>
    %cst_230 = arith.constant 0.797884583 : f32
    %343 = vector.broadcast %cst_230 : f32 to vector<8x64xf32>
    %344 = arith.mulf %343, %342 : vector<8x64xf32>
    %345 = math.tanh %344 : vector<8x64xf32>
    %cst_231 = arith.constant 1.000000e+00 : f32
    %346 = vector.broadcast %cst_231 : f32 to vector<8x64xf32>
    %347 = arith.addf %346, %345 : vector<8x64xf32>
    %348 = arith.mulf %337, %347 : vector<8x64xf32>
    %349 = arith.truncf %348 : vector<8x64xf32> to vector<8x64xbf16>
    %c1_232 = arith.constant 1 : index
    %c0_233 = arith.constant 0 : index
    %c0_234 = arith.constant 0 : index
    %350 = vector.load %arg11[%c1_232, %c0_233, %c0_234] : memref<2x64x32xbf16, #tpu.memory_space<vmem>>, vector<1x64x32xbf16>
    %351 = vector.shape_cast %350 : vector<1x64x32xbf16> to vector<64x32xbf16>
    %cst_235 = arith.constant dense<0.000000e+00> : vector<8x32xf32>
    %352 = tpu.matmul %349, %351, %cst_235 {dimension_numbers = #tpu.dot_dimension_numbers<[1], [0], [0], [1], [0, 0, 1, 1], [], []>} : vector<8x64xbf16>, vector<64x32xbf16>, vector<8x32xf32> -> vector<8x32xf32>
    %c1_236 = arith.constant 1 : index
    %c0_237 = arith.constant 0 : index
    %c0_238 = arith.constant 0 : index
    %353 = vector.load %arg17[%c1_236, %c0_237, %c0_238] : memref<2x1x32xf32, #tpu.memory_space<vmem>>, vector<1x1x32xf32>
    %354 = vector.shape_cast %353 : vector<1x1x32xf32> to vector<1x32xf32>
    %355 = vector.broadcast %354 : vector<1x32xf32> to vector<8x32xf32>
    %356 = arith.addf %352, %355 : vector<8x32xf32>
    %357 = arith.addf %356, %327 : vector<8x32xf32>
    %c1_239 = arith.constant 1 : index
    %c0_240 = arith.constant 0 : index
    %c0_241 = arith.constant 0 : index
    %358 = vector.load %arg20[%c1_239, %c0_240, %c0_241] : memref<2x1x32xf32, #tpu.memory_space<vmem>>, vector<1x1x32xf32>
    %359 = vector.shape_cast %358 : vector<1x1x32xf32> to vector<1x32xf32>
    %c1_242 = arith.constant 1 : index
    %c0_243 = arith.constant 0 : index
    %c0_244 = arith.constant 0 : index
    %360 = vector.load %arg21[%c1_242, %c0_243, %c0_244] : memref<2x1x32xf32, #tpu.memory_space<vmem>>, vector<1x1x32xf32>
    %361 = vector.shape_cast %360 : vector<1x1x32xf32> to vector<1x32xf32>
    %cst_245 = arith.constant dense<0.000000e+00> : vector<8xf32>
    %362 = vector.multi_reduction <add>, %357, %cst_245 [1] : vector<8x32xf32> to vector<8xf32>
    %363 = vector.shape_cast %362 : vector<8xf32> to vector<8x1xf32>
    %cst_246 = arith.constant 3.200000e+01 : f32
    %364 = vector.broadcast %cst_246 : f32 to vector<8x1xf32>
    %365 = arith.divf %363, %364 : vector<8x1xf32>
    %366 = vector.broadcast %365 : vector<8x1xf32> to vector<8x32xf32>
    %367 = arith.subf %357, %366 : vector<8x32xf32>
    %368 = arith.mulf %367, %367 : vector<8x32xf32>
    %cst_247 = arith.constant dense<0.000000e+00> : vector<8xf32>
    %369 = vector.multi_reduction <add>, %368, %cst_247 [1] : vector<8x32xf32> to vector<8xf32>
    %370 = vector.shape_cast %369 : vector<8xf32> to vector<8x1xf32>
    %cst_248 = arith.constant 3.200000e+01 : f32
    %371 = vector.broadcast %cst_248 : f32 to vector<8x1xf32>
    %372 = arith.divf %370, %371 : vector<8x1xf32>
    %cst_249 = arith.constant 9.99999996E-13 : f32
    %373 = vector.broadcast %cst_249 : f32 to vector<8x1xf32>
    %374 = arith.addf %372, %373 : vector<8x1xf32>
    %375 = math.rsqrt %374 : vector<8x1xf32>
    %376 = vector.broadcast %375 : vector<8x1xf32> to vector<8x32xf32>
    %377 = arith.mulf %367, %376 : vector<8x32xf32>
    %378 = vector.broadcast %359 : vector<1x32xf32> to vector<8x32xf32>
    %379 = arith.mulf %377, %378 : vector<8x32xf32>
    %380 = vector.broadcast %361 : vector<1x32xf32> to vector<8x32xf32>
    %381 = arith.addf %379, %380 : vector<8x32xf32>
    %c0_250 = arith.constant 0 : index
    %c0_251 = arith.constant 0 : index
    %c0_252 = arith.constant 0 : index
    %382 = vector.load %arg22[%c0_250, %c0_251, %c0_252] : memref<1x8x32xf32, #tpu.memory_space<vmem>>, vector<1x8x32xf32>
    %383 = vector.shape_cast %382 : vector<1x8x32xf32> to vector<8x32xf32>
    %384 = vector.shape_cast %381 : vector<8x32xf32> to vector<1x8x32xf32>
    tpu.vector_store %arg22[%c0_250, %c0_251, %c0_252], %384 {strides = array<i32>} : memref<1x8x32xf32, #tpu.memory_space<vmem>>, vector<1x8x32xf32>,
    return
  }
  func.func @transform_0(%arg0: i32) -> (i32, i32, i32) {
    %c0_i32 = arith.constant 0 : i32
    %c0_i32_0 = arith.constant 0 : i32
    %c0_i32_1 = arith.constant 0 : i32
    return %arg0, %c0_i32, %c0_i32_0 : i32, i32, i32
  }
  func.func @transform_1(%arg0: i32) -> (i32, i32, i32) {
    %c0_i32 = arith.constant 0 : i32
    %c0_i32_0 = arith.constant 0 : i32
    %c0_i32_1 = arith.constant 0 : i32
    return %arg0, %c0_i32, %c0_i32_0 : i32, i32, i32
  }
  func.func @transform_2(%arg0: i32) -> (i32, i32) {
    %c0_i32 = arith.constant 0 : i32
    %c0_i32_0 = arith.constant 0 : i32
    %c0_i32_1 = arith.constant 0 : i32
    return %c0_i32, %c0_i32_0 : i32, i32
  }
  func.func @transform_3(%arg0: i32) -> (i32, i32) {
    %c0_i32 = arith.constant 0 : i32
    %c0_i32_0 = arith.constant 0 : i32
    %c0_i32_1 = arith.constant 0 : i32
    return %c0_i32, %c0_i32_0 : i32, i32
  }
  func.func @transform_4(%arg0: i32) -> (i32, i32) {
    %c0_i32 = arith.constant 0 : i32
    %c0_i32_0 = arith.constant 0 : i32
    %c0_i32_1 = arith.constant 0 : i32
    return %c0_i32, %c0_i32_0 : i32, i32
  }
  func.func @transform_5(%arg0: i32) -> (i32, i32, i32, i32) {
    %c0_i32 = arith.constant 0 : i32
    %c0_i32_0 = arith.constant 0 : i32
    %c0_i32_1 = arith.constant 0 : i32
    %c0_i32_2 = arith.constant 0 : i32
    %c0_i32_3 = arith.constant 0 : i32
    return %c0_i32, %c0_i32_0, %c0_i32_1, %c0_i32_2 : i32, i32, i32, i32
  }
  func.func @transform_6(%arg0: i32) -> (i32, i32, i32, i32) {
    %c0_i32 = arith.constant 0 : i32
    %c0_i32_0 = arith.constant 0 : i32
    %c0_i32_1 = arith.constant 0 : i32
    %c0_i32_2 = arith.constant 0 : i32
    %c0_i32_3 = arith.constant 0 : i32
    return %c0_i32, %c0_i32_0, %c0_i32_1, %c0_i32_2 : i32, i32, i32, i32
  }
  func.func @transform_7(%arg0: i32) -> (i32, i32, i32, i32) {
    %c0_i32 = arith.constant 0 : i32
    %c0_i32_0 = arith.constant 0 : i32
    %c0_i32_1 = arith.constant 0 : i32
    %c0_i32_2 = arith.constant 0 : i32
    %c0_i32_3 = arith.constant 0 : i32
    return %c0_i32, %c0_i32_0, %c0_i32_1, %c0_i32_2 : i32, i32, i32, i32
  }
  func.func @transform_8(%arg0: i32) -> (i32, i32, i32, i32) {
    %c0_i32 = arith.constant 0 : i32
    %c0_i32_0 = arith.constant 0 : i32
    %c0_i32_1 = arith.constant 0 : i32
    %c0_i32_2 = arith.constant 0 : i32
    %c0_i32_3 = arith.constant 0 : i32
    return %c0_i32, %c0_i32_0, %c0_i32_1, %c0_i32_2 : i32, i32, i32, i32
  }
  func.func @transform_9(%arg0: i32) -> (i32, i32, i32) {
    %c0_i32 = arith.constant 0 : i32
    %c0_i32_0 = arith.constant 0 : i32
    %c0_i32_1 = arith.constant 0 : i32
    %c0_i32_2 = arith.constant 0 : i32
    return %c0_i32, %c0_i32_0, %c0_i32_1 : i32, i32, i32
  }
  func.func @transform_10(%arg0: i32) -> (i32, i32, i32) {
    %c0_i32 = arith.constant 0 : i32
    %c0_i32_0 = arith.constant 0 : i32
    %c0_i32_1 = arith.constant 0 : i32
    %c0_i32_2 = arith.constant 0 : i32
    return %c0_i32, %c0_i32_0, %c0_i32_1 : i32, i32, i32
  }
  func.func @transform_11(%arg0: i32) -> (i32, i32, i32, i32) {
    %c0_i32 = arith.constant 0 : i32
    %c0_i32_0 = arith.constant 0 : i32
    %c0_i32_1 = arith.constant 0 : i32
    %c0_i32_2 = arith.constant 0 : i32
    %c0_i32_3 = arith.constant 0 : i32
    return %c0_i32, %c0_i32_0, %c0_i32_1, %c0_i32_2 : i32, i32, i32, i32
  }
  func.func @transform_12(%arg0: i32) -> (i32, i32, i32, i32) {
    %c0_i32 = arith.constant 0 : i32
    %c0_i32_0 = arith.constant 0 : i32
    %c0_i32_1 = arith.constant 0 : i32
    %c0_i32_2 = arith.constant 0 : i32
    %c0_i32_3 = arith.constant 0 : i32
    return %c0_i32, %c0_i32_0, %c0_i32_1, %c0_i32_2 : i32, i32, i32, i32
  }
  func.func @transform_13(%arg0: i32) -> (i32, i32, i32, i32) {
    %c0_i32 = arith.constant 0 : i32
    %c0_i32_0 = arith.constant 0 : i32
    %c0_i32_1 = arith.constant 0 : i32
    %c0_i32_2 = arith.constant 0 : i32
    %c0_i32_3 = arith.constant 0 : i32
    return %c0_i32, %c0_i32_0, %c0_i32_1, %c0_i32_2 : i32, i32, i32, i32
  }
  func.func @transform_14(%arg0: i32) -> (i32, i32, i32) {
    %c0_i32 = arith.constant 0 : i32
    %c0_i32_0 = arith.constant 0 : i32
    %c0_i32_1 = arith.constant 0 : i32
    %c0_i32_2 = arith.constant 0 : i32
    return %c0_i32, %c0_i32_0, %c0_i32_1 : i32, i32, i32
  }
  func.func @transform_15(%arg0: i32) -> (i32, i32, i32) {
    %c0_i32 = arith.constant 0 : i32
    %c0_i32_0 = arith.constant 0 : i32
    %c0_i32_1 = arith.constant 0 : i32
    %c0_i32_2 = arith.constant 0 : i32
    return %c0_i32, %c0_i32_0, %c0_i32_1 : i32, i32, i32
  }
  func.func @transform_16(%arg0: i32) -> (i32, i32, i32) {
    %c0_i32 = arith.constant 0 : i32
    %c0_i32_0 = arith.constant 0 : i32
    %c0_i32_1 = arith.constant 0 : i32
    %c0_i32_2 = arith.constant 0 : i32
    return %c0_i32, %c0_i32_0, %c0_i32_1 : i32, i32, i32
  }
  func.func @transform_17(%arg0: i32) -> (i32, i32, i32) {
    %c0_i32 = arith.constant 0 : i32
    %c0_i32_0 = arith.constant 0 : i32
    %c0_i32_1 = arith.constant 0 : i32
    %c0_i32_2 = arith.constant 0 : i32
    return %c0_i32, %c0_i32_0, %c0_i32_1 : i32, i32, i32
  }
  func.func @transform_18(%arg0: i32) -> (i32, i32, i32) {
    %c0_i32 = arith.constant 0 : i32
    %c0_i32_0 = arith.constant 0 : i32
    %c0_i32_1 = arith.constant 0 : i32
    %c0_i32_2 = arith.constant 0 : i32
    return %c0_i32, %c0_i32_0, %c0_i32_1 : i32, i32, i32
  }
  func.func @transform_19(%arg0: i32) -> (i32, i32, i32) {
    %c0_i32 = arith.constant 0 : i32
    %c0_i32_0 = arith.constant 0 : i32
    %c0_i32_1 = arith.constant 0 : i32
    %c0_i32_2 = arith.constant 0 : i32
    return %c0_i32, %c0_i32_0, %c0_i32_1 : i32, i32, i32
  }
  func.func @transform_20(%arg0: i32) -> (i32, i32, i32) {
    %c0_i32 = arith.constant 0 : i32
    %c0_i32_0 = arith.constant 0 : i32
    %c0_i32_1 = arith.constant 0 : i32
    %c0_i32_2 = arith.constant 0 : i32
    return %c0_i32, %c0_i32_0, %c0_i32_1 : i32, i32, i32
  }
  func.func @transform_21(%arg0: i32) -> (i32, i32, i32) {
    %c0_i32 = arith.constant 0 : i32
    %c0_i32_0 = arith.constant 0 : i32
    %c0_i32_1 = arith.constant 0 : i32
    return %arg0, %c0_i32, %c0_i32_0 : i32, i32, i32
  }
}

</mosaic_0001>

<bundles_post_ra>
// kernel: tpu_custom_call.1
= control target key start
LH: loop header
LB: loop body
LE: loop exit
PB: predicated region body
PF: predicated region fallthrough
CT: control target
= control target key end

     0   :  { %s2868_s0 = inlined_call_operand.vmem [shape: f32[2,8,32], index: 0, kind: input, shape index: {}]   ;;  %s2869_s1 = inlined_call_operand.vmem [shape: f32[2,1,8], index: 1, kind: input, shape index: {}]   ;;  %s2870_s2 = inlined_call_operand.vmem [shape: f32[8,32], index: 2, kind: input, shape index: {}]   ;;  %s2871_s3 = inlined_call_operand.vmem [shape: f32[1,32], index: 3, kind: input, shape index: {}]   ;;  %s2872_s4 = inlined_call_operand.vmem [shape: f32[1,32], index: 4, kind: input, shape index: {}]   ;;  %s2873_s5 = inlined_call_operand.vmem [shape: bf16[2,2,32,16], index: 5, kind: input, shape index: {}]   ;;  %s2874_s6 = inlined_call_operand.vmem [shape: bf16[2,2,32,16], index: 6, kind: input, shape index: {}]   ;;  %s2875_s7 = inlined_call_operand.vmem [shape: bf16[2,2,32,16], index: 7, kind: input, shape index: {}]   ;;  %s2876_s8 = inlined_call_operand.vmem [shape: bf16[2,2,16,32], index: 8, kind: input, shape index: {}]   ;;  %s2877_s9 = inlined_call_operand.vmem [shape: bf16[2,32,64], index: 9, kind: input, shape index: {}]   ;;  %s2878_s10 = inlined_call_operand.vmem [shape: bf16[2,64,32], index: 10, kind: input, shape index: {}]   ;;  %s2879_s11 = inlined_call_operand.vmem [shape: f32[2,2,1,16], index: 11, kind: input, shape index: {}]   ;;  %s2880_s12 = inlined_call_operand.vmem [shape: f32[2,2,1,16], index: 12, kind: input, shape index: {}]   ;;  %s2881_s13 = inlined_call_operand.vmem [shape: f32[2,2,1,16], index: 13, kind: input, shape index: {}]   ;;  %s2882_s14 = inlined_call_operand.vmem [shape: f32[2,1,32], index: 14, kind: input, shape index: {}]   ;;  %s2883_s15 = inlined_call_operand.vmem [shape: f32[2,1,64], index: 15, kind: input, shape index: {}]   ;;  %s2884_s16 = inlined_call_operand.vmem [shape: f32[2,1,32], index: 16, kind: input, shape index: {}]   ;;  %s2885_s17 = inlined_call_operand.vmem [shape: f32[2,1,32], index: 17, kind: input, shape index: {}]   ;;  %s2886_s18 = inlined_call_operand.vmem [shape: f32[2,1,32], index: 18, kind: input, shape index: {}]   ;;  %s2887_s19 = inlined_call_operand.vmem [shape: f32[2,1,32], index: 19, kind: input, shape index: {}]   ;;  %s2888_s20 = inlined_call_operand.vmem [shape: f32[2,1,32], index: 20, kind: input, shape index: {}]   ;;  %s2889_s21 = inlined_call_operand.hbm [shape: f32[2,8,32], index: 21, kind: output, shape index: {}]  }
   0x1   :  { %2902 = sst [smem:[#allocation12_spill]] %s2868_s0 }
   0x2   :  { %2903 = sst [smem:[#allocation13_spill]] %s2869_s1 }
   0x3   :  { %2904 = sst [smem:[#allocation14_spill]] %s2870_s2 }
   0x4   :  { %2905 = sst [smem:[#allocation15_spill]] %s2871_s3 }
   0x5   :  { %2906 = sst [smem:[#allocation16_spill]] %s2872_s4 }
   0x6   :  { %2907 = sst [smem:[#allocation17_spill]] %s2873_s5 }
   0x7   :  { %2908 = sst [smem:[#allocation18_spill]] %s2874_s6 }
   0x8   :  { %2909 = sst [smem:[#allocation19_spill]] %s2875_s7 }
   0x9   :  { %2910 = sst [smem:[#allocation20_spill]] %s2889_s21 }
   0xa   :  { %26 = vsyncpa [#allocation3], 0 }
   0xb   :  { %28 = vsyncpa [#allocation3 + $0x1], 0  ;;  %s2481_s2 = smov 0   ;;  %s2483_s25 = smov 0  }
   0xc   :  { %s2485_s26 = smov 0   ;;  %s2487_s27 = smov 0  }
   0xd LB: > { %2911 = sst [smem:[#allocation5_spill]] %s2356_s2  ;;  %s2502_s3 = sadd.s32 4294967295, %s2368_s27   ;;  %s2368_s27 = sphi %s2487_s27, %s2935_s27   ;;  %s2364_s26 = sphi %s2485_s26, %s2940_s26   ;;  %s2360_s25 = sphi %s2483_s25, %s2939_s25   ;;  %s2356_s2 = sphi %s2481_s2, %s2938_s2  }
   0xe   : > { %2912 = sst [smem:[#allocation6_spill]] %s2364_s26  ;;  %s1897_s28 = sadd.s32 4294967294, %s2368_s27  }
   0xf   : > { %2913 = sst [smem:[#allocation7_spill]] %s2368_s27  ;;  %s2506_s29 = sadd.s32 1, %s2368_s27  }
  0x10   : > { %2914 = sst [smem:[#allocation8_spill]] %s2506_s29  ;;  %s492_s0 = sadd.s32 1, %s2364_s26 }
  0x11   : > { %s489_s4 = ssub.s32 %s2368_s27, %s2506_s29  ;;  %p502_p0 = scmp.ne.s32.totalorder %s2364_s26, %s2360_s25 }
  0x12   : > { %p490_p1 = scmp.eq.s32.totalorder %s489_s4, 0  ;;  %p503_p2 = scmp.eq.s32.totalorder %s2502_s3, 1 }
  0x13   : > { %p508_p3 = scmp.ne.s32.totalorder %s2360_s25, %s2356_s2  ;;  %p509_p4 = scmp.eq.s32.totalorder %s1897_s28, 1 }
  0x14   : > { %s2517_s30 = scalar_select %p490_p1, %s2364_s26, %s492_s0  }
  0x15   : > { %p2519_p5 = por %p503_p2, %p502_p0  ;;  %p2523_p6 = por %p509_p4, %p508_p3 }
  0x16   : > { %2915 = sst [smem:[#allocation9_spill]] %s2517_s30  ;;  %p1900_p7 = scmp.ge.s32.totalorder %s2368_s27, 1 }
  0x17   : > { %s2916_s5 = scalar_select %p2519_p5, 1, 0 }
  0x18   : > { %s2918_s22 = scalar_select %p2523_p6, 1, 0 }
  0x19   : > { %2917 = sst [smem:[#allocation10_spill]] %s2916_s5  ;;  %p597_p8 = scmp.lt.s32.totalorder %s2368_s27, 3 }
  0x1a   : > { %2919 = sst [smem:[#allocation11_spill]] %s2918_s22 }
  0x1b   : > { %p598_p9 = pnand %p1900_p7, %p597_p8 }
  0x1c   : > { %p659_p10 = scmp.lt.s32.totalorder (!%p598_p9), %s2502_s3, 1  ;;  %s2920_s0 = sld [smem:[#allocation13_spill]] (!%p598_p9) }
  0x1d   : > { %601 = sbr.rel (%p598_p9) target bundleno = 4368 (0x1110), region = 104  ;;  %s2921_s29 = sld [smem:[#allocation14_spill]] (!%p598_p9) }
  0x1e   : > { %s2922_s27 = sld [smem:[#allocation12_spill]] (!%p598_p9)  ;;  %s656_s24 = sand.u32 (!%p598_p9), 1, %s2360_s25  }
  0x1f   : > { %s2925_s6 = sld [smem:[#allocation18_spill]] (!%p598_p9)  ;;  %s1901_s28 = sshll.u32 (!%p598_p9), %s656_s24, 3 }
  0x20   : > { %s2926_s7 = sld [smem:[#allocation19_spill]] (!%p598_p9)  ;;  %s1814_s2 = scalar_lea.sflag (!%p598_p9), [#allocation3], %s656_s24 }
  0x21   : > { %s2927_s26 = sld [smem:[#allocation15_spill]] (!%p598_p9) }
  0x22   : > { %s2531_s23 = scalar_select %p659_p10, %s2502_s3, 1  ;;  %vm673_vm0 = vcmask 261120   ;;  %v2370_v4 = vmov 32.0   ;;  %v2249_v42 = vld [vmem:[%s2880_s12] ss:$0 sm:$0xff]  ;;  %vm816_vm5 = vcmask 130048  }
  0x23   : > { %v669_v0 = vld [vmem:[%s2921_s29] sm:$0xff]  ;;  %2274 = vrcp.f32 %v2370_v4  ;;  %vm858_vm6 = vcmask 1043456   ;;  %vm841_vm7 = vcmask 64512   ;;  %vm1207_vm11 = vcmask 523264  }
  0x24   : > { %s1902_s1 = sshll.u32 %s2531_s23, 3  ;;  %v2248_v46 = vld [vmem:[%s2879_s11] ss:$0 sm:$0xff]  ;;  %v2252_v62 = vld [vmem:[%s2880_s12 + $0x1] ss:$0 sm:$0xff] }
  0x25   : > { %s662_s5 = scalar_lea.vmem %s2922_s27, %s1902_s1  ;;  %s2923_s27 = sld [smem:[#allocation17_spill]]  ;;  %v2168_v17 = vld [vmem:[%s2925_s6 + $0x8] sm:$0xff]  ;;  %v2167_v20 = vld [vmem:[%s2925_s6] sm:$0xff]  ;;  %v2175_v24 = vld [vmem:[%s2925_s6 + $0x18] sm:$0xff] }
  0x26   : > { %v668_v1 = vld [vmem:[%s662_s5] sm:$0xff]  ;;  %v2170_v18 = vld [vmem:[%s2926_s7 + $0x8] sm:$0xff]  ;;  %774 = vmatpush.bf16.msra.mxu1 %v2168_v17  ;;  %v2174_v27 = vld [vmem:[%s2925_s6 + $0x10] sm:$0xff]  ;;  %s2928_s5 = sld [smem:[#allocation16_spill]]  ;;  %s2929_s1 = scalar_lea.vmem %s2920_s0, %s2531_s23 }
  0x27   : > { %v670_v2 = vadd.f32 %v669_v0, %v668_v1  ;;  %807 = vmatpush.bf16.msra.mxu2 %v2170_v18  ;;  %v2169_v21 = vld [vmem:[%s2926_s7] sm:$0xff]  ;;  %v2177_v48 = vld [vmem:[%s2926_s7 + $0x18] sm:$0xff]  ;;  %v2176_v53 = vld [vmem:[%s2926_s7 + $0x10] sm:$0xff]  ;;  %s2162_s23 = sshll.u32 %s2502_s3, 3  ;;  %s658_s0 = scalar_lea.vmem [#allocation2], %s1901_s28 }
  0x28   : > { %v2246_v35 = vld [vmem:[%s2927_s26] ss:$0 sm:$0xff]  ;;  %s1826_s3 = sshll.u32 %s658_s0, 4  ;;  %s1827_s3 = int_to_ptr.vmem [resolvable:$true] %s1826_s3 }
  0x29   : > { %v674_v3 = vsel %vm673_vm0, %v670_v2, 0.0  ;;  %v2275_v5 = vpop.eup %2274  ;;  %v2250_v49 = vld [vmem:[%s2881_s13] ss:$0 sm:$0xff] }
  0x2a   : > { %675 = vadd.xlane.f32.xlu0 %v674_v3  ;;  %v678_v6 = vmul.f32 32.0, %v2275_v5  ;;  %vm682_vm1 = vweird.f32 %v2275_v5  ;;  %775 = vmatpush.bf16.msra.mxu1 %v2167_v20 }
  0x2b   : > { %s2924_s29 = smov %s2923_s27  ;;  %v2166_v16 = vld [vmem:[%s2923_s27 + $0x8] sm:$0xff]  ;;  %808 = vmatpush.bf16.msra.mxu2 %v2169_v21 }
  0x2c   : > { %v679_v7 = vsub.f32 1.0, %v678_v6  ;;  %741 = vmatpush.bf16.msra.mxu0 %v2166_v16  ;;  %v2165_v19 = vld [vmem:[%s2924_s29] sm:$0xff]  ;;  %v2173_v23 = vld [vmem:[%s2924_s29 + $0x18] sm:$0xff]  ;;  %v2172_v26 = vld [vmem:[%s2924_s29 + $0x10] sm:$0xff] }
  0x2d   : > { %v2247_v37 = vld [vmem:[%s2928_s5] ss:$0 sm:$0xff]  ;;  %s2930_s5 = sld [smem:[#allocation20_spill]] }
  0x2e   : > { %v680_v8 = vmul.f32 %v2275_v5, %v679_v7  ;;  %906 = vmatpush.bf16.msrb.mxu1 %v2173_v23 }
  0x2f   : > { %941 = vmatpush.bf16.msrb.mxu2 %v2175_v24 }
  0x30   : > { %v681_v9 = vadd.f32 %v2275_v5, %v680_v8  ;;  %742 = vmatpush.bf16.msra.mxu0 %v2165_v19 }
  0x32   : > { %v2545_v10 = vsel %vm682_vm1, %v2275_v5, %v681_v9  ;;  %907 = vmatpush.bf16.msrb.mxu1 %v2172_v26  ;;  %v2623_v5 = vld [vmem:[%s2929_s1] ss:$0 sm:$0xff] }
  0x33   : > { %942 = vmatpush.bf16.msrb.mxu2 %v2174_v27  ;;  %v2251_v27 = vld [vmem:[%s2879_s11 + $0x1] ss:$0 sm:$0xff]  ;;  %s1824_s22 = scalar_lea.hbm %s2930_s5, %s2162_s23  ;;  %s2326_s28 = scalar_lea.hbm %s2930_s5, 16 }
  0x9d   : > { %v676_v11 = vpop.xlane.xlu0 %675 }
  0x9e   : > { %v684_v12 = vmul.f32 %v2545_v10, %v676_v11 }
  0xa0   : > { %v685_v13 = vsub.f32 %v670_v2, %v684_v12  ;;  %v2253_v12 = vld [vmem:[%s2881_s13 + $0x1] ss:$0 sm:$0xff] }
  0xa2   : > { %v686_v14 = vmul.f32 %v685_v13, %v685_v13 }
  0xa4   : > { %v687_v15 = vsel %vm673_vm0, %v686_v14, 0.0 }
  0xa5   : > { %688 = vadd.xlane.f32.xlu0 %v687_v15 }
 0x118   : > { %v689_v22 = vpop.xlane.xlu0 %688 }
 0x119   : > { %v690_v25 = vmul.f32 %v689_v22, %v2545_v10 }
 0x11b   : > { %v691_v28 = vadd.f32 1e-12, %v690_v25 }
 0x11d   : > { %2276 = vrsqrt.f32 %v691_v28  ;;  %vm698_vm3 = vweird.f32 %v691_v28 }
 0x123   : > { %v2277_v29 = vpop.eup %2276 }
 0x124   : > { %v693_v30 = vmul.f32 %v2277_v29, %v691_v28  ;;  %vm699_vm2 = vweird.f32 %v2277_v29 }
 0x125   : > { %vm700_vm4 = vmor %vm698_vm3, %vm699_vm2 }
 0x126   : > { %v694_v31 = vmul.f32 %v2277_v29, %v693_v30  ;;  %v2171_v30 = vld [vmem:[%s2876_s8] sm:$0xff] }
 0x128   : > { %v695_v32 = vmul.f32 0.5, %v694_v31 }
 0x12a   : > { %v696_v33 = vsub.f32 1.5, %v695_v32 }
 0x12c   : > { %v697_v34 = vmul.f32 %v2277_v29, %v696_v33 }
 0x12e   : > { %v701_v36 = vsel %vm700_vm4, %v2277_v29, %v697_v34 }
 0x12f   : > { %v702_v38 = vmul.f32 %v701_v36, %v685_v13 }
 0x131   : > { %v706_v39 = vmul.f32 %v2246_v35, %v702_v38 }
 0x133   : > { %v2586_v40 = vadd.f32 %v2247_v37, %v706_v39 }
 0x135   : > { %v711_v41 = vpack.c.bf16 %v2586_v40, %v2586_v40 }
 0x137   : > { %1911 = vmatmul.msk.bf16.vlgmr.msra.gmra.mxu0 %vm673_vm0, %v711_v41  ;;  %1920 = vmatmul.msk.bf16.vlgmr.msra.gmra.mxu1 %vm673_vm0, %v711_v41 }
 0x138   : > { %1929 = vmatmul.msk.bf16.vlgmr.msra.gmra.mxu2 %vm673_vm0, %v711_v41 }
 0x147   : > { %1945 = vmatmul.msk.bf16.vlgmr.msrb.gmra.mxu1 %vm673_vm0, %v711_v41 }
 0x148   : > { %1959 = vmatmul.msk.bf16.vlgmr.msrb.gmra.mxu2 %vm673_vm0, %v711_v41 }
 0x1b4   : > { %v744_v43 = vpop.f32.mrf.mxu0  ;;  %v777_v44 = vpop.f32.mrf.mxu1 }
 0x1b5   : > { %v778_v45 = vadd.f32 %v2249_v42, %v777_v44  ;;  %v745_v51 = vadd.f32 %v2248_v46, %v744_v43 }
 0x1b7   : > { %v815_v47 = vpack.c.bf16 %v778_v45, %v778_v45  ;;  %v814_v58 = vpack.c.bf16 %v745_v51, %v745_v51 }
 0x1b9   : > { %v821_v50 = vsel %vm816_vm5, %v815_v47, 0  ;;  %v2178_v47 = vld [vmem:[%s2876_s8 + $0x8] sm:$0xff] }
 0x1ba   : > { %830 = vmatpush.bf16.xpose.msra.mxu3 %v821_v50  ;;  %1058 = vmatpush.bf16.msra.mxu2 %v2178_v47 }
 0x1bb   : > { %v810_v52 = vpop.f32.mrf.mxu2 }
 0x1bc   : > { %v811_v54 = vadd.f32 %v2250_v49, %v810_v52  ;;  %v746_v55 = vpop.f32.mrf.mxu0  ;;  %v779_v56 = vpop.f32.mrf.mxu1 }
 0x1bd   : > { %v2254_v55 = vld [vmem:[%s2882_s14] ss:$0 sm:$0xff] }
 0x1be   : > { %v854_v57 = vpack.c.bf16 %v811_v54, %v811_v54 }
 0x1c0   : > { %v860_v59 = vsel %vm858_vm6, %v854_v57, 0 }
 0x1c1   : > { %869 = vmatpush.bf16.msrb.mxu0 %v860_v59  ;;  %1930 = vmatmul.msk.bf16.vlgmr.msra.gmra.mxu3 %vm816_vm5, %v814_v58 }
 0x1c2   : > { %976 = vmatpush.bf16.msrb.mxu3 %v2177_v48 }
 0x1c3   : > { %v812_v60 = vpop.f32.mrf.mxu2 }
 0x1c4   : > { %v909_v61 = vpop.f32.mrf.mxu1 }
 0x1c5   : > { %v910_v28 = vadd.f32 %v2251_v27, %v909_v61 }
 0x1c6   : > { %977 = vmatpush.bf16.msrb.mxu3 %v2176_v53 }
 0x1c7   : > { %v983_v29 = vpack.c.bf16 %v910_v28, %v910_v28 }
 0x1ca   : > { %1080 = vmatpush.bf16.msra.mxu3 %v2171_v30 }
 0x1cb   : > { %v944_v63 = vpop.f32.mrf.mxu2 }
 0x1cc   : > { %v945_v0 = vadd.f32 %v2252_v62, %v944_v63  ;;  %v911_v1 = vpop.f32.mrf.mxu1 }
 0x1ce   : > { %v984_v2 = vpack.c.bf16 %v945_v0, %v945_v0 }
 0x1d0   : > { %v989_v3 = vsel %vm816_vm5, %v984_v2, 0 }
 0x1d1   : > { %998 = vmatpush.bf16.xpose.msra.mxu0 %v989_v3  ;;  %1973 = vmatmul.msk.bf16.vlgmr.msrb.gmra.mxu3 %vm673_vm0, %v711_v41  ;;  %v2180_v3 = vld [vmem:[%s2877_s9 + $0x8] sm:$0xff] }
 0x1d3   : > { %v946_v4 = vpop.f32.mrf.mxu2 }
 0x244   : > { %v832_v6 = vpop.f32.mrf.mxu3 }
 0x245   : > { %v836_v7 = vmul.f32 0.25, %v832_v6 }
 0x247   : > { %v840_v8 = vadd.f32 %v2623_v5, %v836_v7 }
 0x249   : > { %v842_v9 = vsel %vm841_vm7, %v840_v8, -inf }
 0x24a   : > { %843 = vmax.xlane.f32.xlu1 %v842_v9 }
 0x24c   : > { %v834_v11 = vpop.f32.mrf.mxu3 }
 0x254   : > { %v979_v13 = vpop.f32.mrf.mxu3 }
 0x255   : > { %v980_v14 = vadd.f32 %v2253_v12, %v979_v13 }
 0x257   : > { %v1018_v15 = vpack.c.bf16 %v980_v14, %v980_v14 }
 0x259   : > { %v1023_v16 = vsel %vm858_vm6, %v1018_v15, 0  ;;  %v2255_v15 = vld [vmem:[%s2885_s17] ss:$0 sm:$0xff] }
 0x25a   : > { %1032 = vmatpush.bf16.msra.mxu1 %v1023_v16 }
 0x25c   : > { %v981_v17 = vpop.f32.mrf.mxu3 }
 0x25d   : > { %v2256_v17 = vld [vmem:[%s2886_s18] ss:$0 sm:$0xff] }
 0x2bd   : > { %v844_v18 = vpop.xlane.xlu1 %843 }
 0x2be   : > { %v845_v19 = vsub.f32 %v840_v8, %v844_v18 }
 0x2c0   : > { %v846_v20 = vmul.f32 1.442695, %v845_v19 }
 0x2c2   : > { %2278 = vpow2.f32 %v846_v20 }
 0x2c8   : > { %v2279_v21 = vpop.eup %2278 }
 0x2c9   : > { %v848_v22 = vsel %vm841_vm7, %v2279_v21, 0.0 }
 0x2ca   : > { %849 = vadd.xlane.f32.xlu1 %v848_v22  ;;  %v2184_v22 = vld [vmem:[%s2878_s10 + $0x18] sm:$0xff] }
 0x2cb   : > { %1215 = vmatpush.bf16.msrb.mxu1 %v2184_v22 }
 0x33d   : > { %v850_v23 = vpop.xlane.xlu1 %849 }
 0x33e   : > { %2280 = vrcp.f32 %v850_v23  ;;  %v2183_v23 = vld [vmem:[%s2878_s10 + $0x10] sm:$0xff] }
 0x33f   : > { %1216 = vmatpush.bf16.msrb.mxu1 %v2183_v23 }
 0x344   : > { %v2281_v24 = vpop.eup %2280 }
 0x345   : > { %v852_v25 = vmul.f32 %v2281_v24, %v2279_v21  ;;  %v2182_v24 = vld [vmem:[%s2878_s10 + $0x8] sm:$0xff] }
 0x346   : > { %1217 = vmatpush.bf16.msrb.mxu1 %v2182_v24  ;;  %v2262_v24 = vld [vmem:[%s2879_s11 + $0x2] ss:$0 sm:$0xff] }
 0x347   : > { %v853_v26 = vpack.c.bf16 %v852_v25, %v852_v25  ;;  %v2181_v25 = vld [vmem:[%s2878_s10] sm:$0xff] }
 0x349   : > { %1931 = vmatmul.msk.bf16.vlgmr.msrb.gmra.mxu0 %vm841_vm7, %v853_v26  ;;  %v2257_v26 = vld [vmem:[%s2883_s15] ss:$0 sm:$0xff] }
 0x34a   : > { %1154 = vmatpush.bf16.msrb.mxu0 %v2180_v3  ;;  %1218 = vmatpush.bf16.msrb.mxu1 %v2181_v25 }
 0x359   : > { %1974 = vmatmul.msk.bf16.vlgmr.msra.gmra.mxu0 %vm816_vm5, %v983_v29 }
 0x3c6   : > { %v871_v31 = vpop.f32.mrf.mxu0 }
 0x3c7   : > { %v875_v32 = vpack.c.bf16 %v871_v31, %v871_v31 }
 0x3c9   : > { %1987 = vmatmul.msk.bf16.vlgmr.msra.gmra.mxu3 %vm816_vm5, %v875_v32 }
 0x3ce   : > { %v873_v33 = vpop.f32.mrf.mxu0 }
 0x3d6   : > { %v1000_v34 = vpop.f32.mrf.mxu0 }
 0x3d7   : > { %v1004_v35 = vmul.f32 0.25, %v1000_v34 }
 0x3d9   : > { %v1005_v36 = vadd.f32 %v2623_v5, %v1004_v35 }
 0x3db   : > { %v1006_v37 = vsel %vm841_vm7, %v1005_v36, -inf }
 0x3dc   : > { %1007 = vmax.xlane.f32.xlu2 %v1006_v37 }
 0x3de   : > { %v1002_v38 = vpop.f32.mrf.mxu0 }
 0x44c   : > { %v1082_v39 = vpop.f32.mrf.mxu3 }
 0x44f   : > { %v1008_v41 = vpop.xlane.xlu2 %1007 }
 0x450   : > { %v1009_v42 = vsub.f32 %v1005_v36, %v1008_v41  ;;  %v2258_v41 = vld [vmem:[%s2884_s16] ss:$0 sm:$0xff] }
 0x452   : > { %v1010_v43 = vmul.f32 1.442695, %v1009_v42 }
 0x454   : > { %2282 = vpow2.f32 %v1010_v43  ;;  %v1084_v44 = vpop.f32.mrf.mxu3 }
 0x45a   : > { %v2283_v45 = vpop.eup %2282 }
 0x45b   : > { %v1012_v46 = vsel %vm841_vm7, %v2283_v45, 0.0 }
 0x45c   : > { %1013 = vadd.xlane.f32.xlu2 %v1012_v46 }
 0x4cf   : > { %v1014_v48 = vpop.xlane.xlu2 %1013 }
 0x4d0   : > { %2284 = vrcp.f32 %v1014_v48 }
 0x4d6   : > { %v2285_v49 = vpop.eup %2284 }
 0x4d7   : > { %v1016_v50 = vmul.f32 %v2285_v49, %v2283_v45 }
 0x4d9   : > { %v1017_v51 = vpack.c.bf16 %v1016_v50, %v1016_v50 }
 0x4db   : > { %1975 = vmatmul.msk.bf16.vlgmr.msra.gmra.mxu1 %vm841_vm7, %v1017_v51 }
 0x558   : > { %v1034_v52 = vpop.f32.mrf.mxu1 }
 0x559   : > { %v1038_v53 = vpack.c.bf16 %v1034_v52, %v1034_v52  ;;  %v2186_v52 = vld [vmem:[%s2924_s29 + $0x28] sm:$0xff] }
 0x55a   : > { %1289 = vmatpush.bf16.msrb.mxu2 %v2186_v52 }
 0x55b   : > { %1982 = vmatmul.msk.bf16.vlgmr.msra.gmra.mxu2 %vm816_vm5, %v1038_v53  ;;  %v2188_v53 = vld [vmem:[%s2925_s6 + $0x28] sm:$0xff] }
 0x55c   : > { %1324 = vmatpush.bf16.msrb.mxu3 %v2188_v53 }
 0x560   : > { %v1036_v54 = vpop.f32.mrf.mxu1 }
 0x561   : > { %v2190_v54 = vld [vmem:[%s2926_s7 + $0x28] sm:$0xff] }
 0x5de   : > { %v1060_v56 = vpop.f32.mrf.mxu2 }
 0x5df   : > { %v1083_v57 = vadd.f32 %v1082_v39, %v1060_v56  ;;  %v2187_v56 = vld [vmem:[%s2925_s6 + $0x20] sm:$0xff] }
 0x5e0   : > { %1325 = vmatpush.bf16.msrb.mxu3 %v2187_v56 }
 0x5e1   : > { %v1090_v58 = vadd.f32 %v2254_v55, %v1083_v57  ;;  %v2185_v55 = vld [vmem:[%s2924_s29 + $0x20] sm:$0xff] }
 0x5e2   : > { %v2189_v57 = vld [vmem:[%s2926_s7 + $0x20] sm:$0xff]  ;;  %1290 = vmatpush.bf16.msrb.mxu2 %v2185_v55 }
 0x5e3   : > { %v1091_v59 = vadd.f32 %v1090_v58, %v2586_v40  ;;  %v2179_v40 = vld [vmem:[%s2877_s9] sm:$0xff] }
 0x5e4   : > { %1155 = vmatpush.bf16.msrb.mxu0 %v2179_v40 }
 0x5e5   : > { %v1094_v60 = vsel %vm673_vm0, %v1091_v59, 0.0 }
 0x5e6   : > { %1095 = vadd.xlane.f32.xlu0 %v1094_v60  ;;  %v1062_v61 = vpop.f32.mrf.mxu2  ;;  %v2195_v60 = vld [vmem:[%s2925_s6 + $0x38] sm:$0xff] }
 0x5e8   : > { %1359 = vmatpush.bf16.msra.mxu0 %v2190_v54 }
 0x5ec   : > { %1360 = vmatpush.bf16.msra.mxu0 %v2189_v57 }
 0x659   : > { %v1096_v62 = vpop.xlane.xlu0 %1095 }
 0x65a   : > { %v1097_v63 = vmul.f32 %v1096_v62, %v2545_v10  ;;  %v2192_v62 = vld [vmem:[%s2924_s29 + $0x30] sm:$0xff] }
 0x65c   : > { %v1098_v0 = vsub.f32 %v1091_v59, %v1097_v63  ;;  %v2193_v59 = vld [vmem:[%s2924_s29 + $0x38] sm:$0xff]  ;;  %v2194_v63 = vld [vmem:[%s2925_s6 + $0x30] sm:$0xff]  ;;  %s1828_s6 = sshll.u32 %s1824_s22, 4  ;;  %s1829_s6 = int_to_ptr.hbm [resolvable:$true] %s1828_s6 }
 0x65d   : > { %1453 = vmatpush.bf16.msra.mxu3 %v2193_v59  ;;  %s2320_s26 = sshra.s32 %s1829_s6, 4  ;;  %s2321_s26 = int_to_ptr.hbm [resolvable:$true] %s2320_s26 }
 0x65e   : > { %v1099_v1 = vmul.f32 %v1098_v0, %v1098_v0  ;;  %s2322_s23 = scalar_lea.hbm %s2321_s26, 8  ;;  %p2327_p0 = scmp.lt.s32.totalorder %s2321_s26, %s2930_s5 }
 0x65f   : > { %p2323_p11 = scmp.ne.s32.totalorder %s2321_s26, %s2322_s23  ;;  %p2328_p1 = scmp.lt.s32.totalorder %s2326_s28, %s2322_s23 }
 0x660   : > { %v1100_v2 = vsel %vm673_vm0, %v1099_v1, 0.0 }
 0x661   : > { %1101 = vadd.xlane.f32.xlu1 %v1100_v2  ;;  %1454 = vmatpush.bf16.msra.mxu3 %v2192_v62  ;;  %p2324_p12 = pnand %p2323_p11, %p2519_p5  ;;  %p2329_p2 = por %p2328_p1, %p2327_p0 }
 0x663   : > { %p2325_p13 = pneg %p2324_p12 }
 0x665   : > { %p2330_p3 = pnand %p2329_p2, %p2325_p13 }
 0x6d4   : > { %v1102_v4 = vpop.xlane.xlu1 %1101 }
 0x6d5   : > { %v1103_v6 = vmul.f32 %v1102_v4, %v2545_v10 }
 0x6d7   : > { %v1104_v7 = vadd.f32 1e-12, %v1103_v6 }
 0x6d9   : > { %2286 = vrsqrt.f32 %v1104_v7  ;;  %vm1111_vm9 = vweird.f32 %v1104_v7 }
 0x6df   : > { %v2287_v8 = vpop.eup %2286 }
 0x6e0   : > { %v1106_v9 = vmul.f32 %v2287_v8, %v1104_v7  ;;  %vm1112_vm8 = vweird.f32 %v2287_v8  ;;  %v2259_v7 = vld [vmem:[%s2887_s19] ss:$0 sm:$0xff] }
 0x6e1   : > { %vm1113_vm10 = vmor %vm1111_vm9, %vm1112_vm8 }
 0x6e2   : > { %v1107_v11 = vmul.f32 %v2287_v8, %v1106_v9  ;;  %v2260_v9 = vld [vmem:[%s2888_s20] ss:$0 sm:$0xff] }
 0x6e4   : > { %v1108_v12 = vmul.f32 0.5, %v1107_v11 }
 0x6e6   : > { %v1109_v13 = vsub.f32 1.5, %v1108_v12 }
 0x6e8   : > { %v1110_v14 = vmul.f32 %v2287_v8, %v1109_v13 }
 0x6ea   : > { %v1114_v16 = vsel %vm1113_vm10, %v2287_v8, %v1110_v14 }
 0x6eb   : > { %v1115_v18 = vmul.f32 %v1114_v16, %v1098_v0 }
 0x6ed   : > { %v1119_v19 = vmul.f32 %v2255_v15, %v1115_v18  ;;  %v2261_v15 = vld [vmem:[%s2881_s13 + $0x2] ss:$0 sm:$0xff] }
 0x6ee   : > { %v2263_v18 = vld [vmem:[%s2880_s12 + $0x2] ss:$0 sm:$0xff] }
 0x6ef   : > { %v1123_v20 = vadd.f32 %v2256_v17, %v1119_v19 }
 0x6f1   : > { %v1124_v21 = vpack.c.bf16 %v1123_v20, %v1123_v20 }
 0x6f3   : > { %1996 = vmatmul.msk.bf16.vlgmr.msrb.gmra.mxu0 %vm673_vm0, %v1124_v21 }
 0x6f4   : > { %1488 = vmatpush.bf16.msrb.mxu0 %v2195_v60 }
 0x6f8   : > { %1489 = vmatpush.bf16.msrb.mxu0 %v2194_v63  ;;  %v2265_v63 = vld [vmem:[%s2879_s11 + $0x3] ss:$0 sm:$0xff] }
 0x770   : > { %v1157_v27 = vpop.f32.mrf.mxu0 }
 0x771   : > { %v1158_v28 = vadd.f32 %v2257_v26, %v1157_v27  ;;  %v2197_v27 = vld [vmem:[%s2926_s7 + $0x38] sm:$0xff] }
 0x773   : > { %v1162_v29 = vmul.f32 0.044715, %v1158_v28  ;;  %v1161_v36 = vmul.f32 0.5, %v1158_v28 }
 0x775   : > { %v1163_v30 = vmul.f32 %v1162_v29, %v1158_v28 }
 0x777   : > { %v1164_v31 = vmul.f32 %v1163_v30, %v1158_v28  ;;  %v2196_v30 = vld [vmem:[%s2926_s7 + $0x30] sm:$0xff] }
 0x778   : > { %v1159_v32 = vpop.f32.mrf.mxu0 }
 0x779   : > { %v1165_v33 = vadd.f32 %v1164_v31, %v1158_v28 }
 0x77b   : > { %v1166_v34 = vmul.f32 0.7978846, %v1165_v33  ;;  %v2264_v33 = vld [vmem:[%s2880_s12 + $0x3] ss:$0 sm:$0xff] }
 0x77d   : > { %2288 = vtanh.f32 %v1166_v34 }
 0x783   : > { %v2289_v35 = vpop.eup %2288 }
 0x784   : > { %v1168_v37 = vadd.f32 1.0, %v2289_v35 }
 0x786   : > { %v1169_v38 = vmul.f32 %v1168_v37, %v1161_v36 }
 0x788   : > { %v1170_v39 = vpack.c.bf16 %v1169_v38, %v1169_v38 }
 0x78a   : > { %2013 = vmatmul.msk.bf16.vlgmr.msrb.gmra.mxu1 %vm1207_vm11, %v1170_v39 }
 0x807   : > { %v1220_v42 = vpop.f32.mrf.mxu1 }
 0x808   : > { %v1221_v43 = vadd.f32 %v2258_v41, %v1220_v42 }
 0x80a   : > { %v1224_v44 = vadd.f32 %v1221_v43, %v1123_v20 }
 0x80c   : > { %v1227_v45 = vsel %vm673_vm0, %v1224_v44, 0.0 }
 0x80d   : > { %1228 = vadd.xlane.f32.xlu2 %v1227_v45 }
 0x80f   : > { %v1222_v46 = vpop.f32.mrf.mxu1 }
 0x880   : > { %v1229_v47 = vpop.xlane.xlu2 %1228 }
 0x881   : > { %v1230_v48 = vmul.f32 %v1229_v47, %v2545_v10 }
 0x883   : > { %v1231_v49 = vsub.f32 %v1224_v44, %v1230_v48  ;;  %v2266_v48 = vld [vmem:[%s2881_s13 + $0x3] ss:$0 sm:$0xff] }
 0x885   : > { %v1232_v50 = vmul.f32 %v1231_v49, %v1231_v49 }
 0x887   : > { %v1233_v51 = vsel %vm673_vm0, %v1232_v50, 0.0 }
 0x888   : > { %1234 = vadd.xlane.f32.xlu0 %v1233_v51 }
 0x8fb   : > { %v1235_v58 = vpop.xlane.xlu0 %1234 }
 0x8fc   : > { %v1236_v61 = vmul.f32 %v1235_v58, %v2545_v10 }
 0x8fe   : > { %v1237_v0 = vadd.f32 1e-12, %v1236_v61 }
 0x900   : > { %2290 = vrsqrt.f32 %v1237_v0  ;;  %vm1244_vm13 = vweird.f32 %v1237_v0 }
 0x906   : > { %v2291_v1 = vpop.eup %2290 }
 0x907   : > { %v1239_v2 = vmul.f32 %v2291_v1, %v1237_v0  ;;  %vm1245_vm12 = vweird.f32 %v2291_v1 }
 0x908   : > { %vm1246_vm14 = vmor %vm1244_vm13, %vm1245_vm12 }
 0x909   : > { %v1240_v3 = vmul.f32 %v2291_v1, %v1239_v2  ;;  %v2191_v2 = vld [vmem:[%s2876_s8 + $0x10] sm:$0xff] }
 0x90b   : > { %v1241_v40 = vmul.f32 0.5, %v1240_v3 }
 0x90d   : > { %v1242_v4 = vsub.f32 1.5, %v1241_v40 }
 0x90f   : > { %v1243_v6 = vmul.f32 %v2291_v1, %v1242_v4 }
 0x911   : > { %v1247_v8 = vsel %vm1246_vm14, %v2291_v1, %v1243_v6 }
 0x912   : > { %v1248_v11 = vmul.f32 %v1247_v8, %v1231_v49 }
 0x914   : > { %v1252_v12 = vmul.f32 %v2259_v7, %v1248_v11 }
 0x916   : > { %v2729_v13 = vadd.f32 %v2260_v9, %v1252_v12 }
 0x918   : > { %v1257_v14 = vpack.c.bf16 %v2729_v13, %v2729_v13 }
 0x91a   : > { %2027 = vmatmul.msk.bf16.vlgmr.msrb.gmra.mxu2 %vm673_vm0, %v1257_v14  ;;  %2041 = vmatmul.msk.bf16.vlgmr.msrb.gmra.mxu3 %vm673_vm0, %v1257_v14 }
 0x91b   : > { %2055 = vmatmul.msk.bf16.vlgmr.msra.gmra.mxu0 %vm673_vm0, %v1257_v14 }
 0x92a   : > { %2073 = vmatmul.msk.bf16.vlgmr.msra.gmra.mxu3 %vm673_vm0, %v1257_v14 }
 0x92b   : > { %2087 = vmatmul.msk.bf16.vlgmr.msrb.gmra.mxu0 %vm673_vm0, %v1257_v14 }
 0x998   : > { %v1362_v16 = vpop.f32.mrf.mxu0 }
 0x999   : > { %v1363_v17 = vadd.f32 %v2261_v15, %v1362_v16 }
 0x99b   : > { %v1401_v19 = vpack.c.bf16 %v1363_v17, %v1363_v17 }
 0x99d   : > { %v1406_v20 = vsel %vm858_vm6, %v1401_v19, 0  ;;  %v1292_v21 = vpop.f32.mrf.mxu2  ;;  %v1327_v22 = vpop.f32.mrf.mxu3 }
 0x99e   : > { %v1328_v23 = vadd.f32 %v2263_v18, %v1327_v22  ;;  %1415 = vmatpush.bf16.msra.mxu2 %v1406_v20  ;;  %v1293_v29 = vadd.f32 %v2262_v24, %v1292_v21  ;;  %v2198_v20 = vld [vmem:[%s2876_s8 + $0x18] sm:$0xff] }
 0x99f   : > { %1605 = vmatpush.bf16.msra.mxu0 %v2198_v20 }
 0x9a0   : > { %v1367_v25 = vpack.c.bf16 %v1328_v23, %v1328_v23  ;;  %v1364_v26 = vpop.f32.mrf.mxu0  ;;  %v1366_v34 = vpack.c.bf16 %v1293_v29, %v1293_v29 }
 0x9a2   : > { %v1372_v28 = vsel %vm816_vm5, %v1367_v25, 0 }
 0x9a3   : > { %1381 = vmatpush.bf16.xpose.msra.mxu1 %v1372_v28 }
 0x9a5   : > { %v1294_v31 = vpop.f32.mrf.mxu2  ;;  %v1329_v32 = vpop.f32.mrf.mxu3 }
 0x9a8   : > { %v1491_v35 = vpop.f32.mrf.mxu0 }
 0x9a9   : > { %v1492_v36 = vadd.f32 %v2264_v33, %v1491_v35 }
 0x9aa   : > { %2056 = vmatmul.msk.bf16.vlgmr.msra.gmra.mxu1 %vm816_vm5, %v1366_v34 }
 0x9ab   : > { %1523 = vmatpush.bf16.msrb.mxu1 %v2197_v27  ;;  %v1531_v37 = vpack.c.bf16 %v1492_v36, %v1492_v36  ;;  %v2267_v27 = vld [vmem:[%s2882_s14 + $0x1] ss:$0 sm:$0xff] }
 0x9ad   : > { %v1536_v38 = vsel %vm816_vm5, %v1531_v37, 0  ;;  %v1456_v39 = vpop.f32.mrf.mxu3 }
 0x9ae   : > { %1545 = vmatpush.bf16.xpose.msrb.mxu2 %v1536_v38  ;;  %v1457_v0 = vadd.f32 %v2265_v63, %v1456_v39  ;;  %v2200_v39 = vld [vmem:[%s2877_s9 + $0x18] sm:$0xff] }
 0x9af   : > { %1524 = vmatpush.bf16.msrb.mxu1 %v2196_v30 }
 0x9b0   : > { %v1493_v41 = vpop.f32.mrf.mxu0  ;;  %v1530_v1 = vpack.c.bf16 %v1457_v0, %v1457_v0 }
 0x9b3   : > { %1627 = vmatpush.bf16.msra.mxu1 %v2191_v2 }
 0x9b5   : > { %v1458_v42 = vpop.f32.mrf.mxu3 }
 0x9ba   : > { %2101 = vmatmul.msk.bf16.vlgmr.msrb.gmra.mxu1 %vm673_vm0, %v1257_v14 }
 0xa27   : > { %v1383_v43 = vpop.f32.mrf.mxu1 }
 0xa28   : > { %v1387_v44 = vmul.f32 0.25, %v1383_v43 }
 0xa2a   : > { %v1388_v45 = vadd.f32 %v2623_v5, %v1387_v44 }
 0xa2c   : > { %v1389_v46 = vsel %vm841_vm7, %v1388_v45, -inf }
 0xa2d   : > { %1390 = vmax.xlane.f32.xlu1 %v1389_v46 }
 0xa2f   : > { %v1385_v47 = vpop.f32.mrf.mxu1 }
 0xa37   : > { %v1526_v49 = vpop.f32.mrf.mxu1 }
 0xa38   : > { %v1527_v50 = vadd.f32 %v2266_v48, %v1526_v49 }
 0xa3a   : > { %v1565_v51 = vpack.c.bf16 %v1527_v50, %v1527_v50  ;;  %v2268_v50 = vld [vmem:[%s2885_s17 + $0x1] ss:$0 sm:$0xff] }
 0xa3c   : > { %v1570_v52 = vsel %vm858_vm6, %v1565_v51, 0 }
 0xa3d   : > { %1579 = vmatpush.bf16.msrb.mxu3 %v1570_v52  ;;  %v2269_v52 = vld [vmem:[%s2886_s18 + $0x1] ss:$0 sm:$0xff] }
 0xa3f   : > { %v1528_v53 = vpop.f32.mrf.mxu1 }
 0xaa0   : > { %v1391_v54 = vpop.xlane.xlu1 %1390 }
 0xaa1   : > { %v1392_v55 = vsub.f32 %v1388_v45, %v1391_v54 }
 0xaa3   : > { %v1393_v56 = vmul.f32 1.442695, %v1392_v55 }
 0xaa5   : > { %2292 = vpow2.f32 %v1393_v56 }
 0xaab   : > { %v2293_v57 = vpop.eup %2292 }
 0xaac   : > { %v1395_v58 = vsel %vm841_vm7, %v2293_v57, 0.0 }
 0xaad   : > { %1396 = vadd.xlane.f32.xlu2 %v1395_v58  ;;  %v2203_v58 = vld [vmem:[%s2878_s10 + $0x30] sm:$0xff] }
 0xb20   : > { %v1397_v59 = vpop.xlane.xlu2 %1396 }
 0xb21   : > { %2294 = vrcp.f32 %v1397_v59  ;;  %v2202_v59 = vld [vmem:[%s2878_s10 + $0x28] sm:$0xff] }
 0xb27   : > { %v2295_v60 = vpop.eup %2294 }
 0xb28   : > { %v1399_v61 = vmul.f32 %v2295_v60, %v2293_v57  ;;  %v2204_v57 = vld [vmem:[%s2878_s10 + $0x38] sm:$0xff]  ;;  %v2201_v60 = vld [vmem:[%s2878_s10 + $0x20] sm:$0xff] }
 0xb29   : > { %1768 = vmatpush.bf16.msra.mxu3 %v2204_v57 }
 0xb2a   : > { %v1400_v62 = vpack.c.bf16 %v1399_v61, %v1399_v61  ;;  %v2270_v61 = vld [vmem:[%s2883_s15 + $0x1] ss:$0 sm:$0xff] }
 0xb2c   : > { %2057 = vmatmul.msk.bf16.vlgmr.msra.gmra.mxu2 %vm841_vm7, %v1400_v62 }
 0xb2d   : > { %1706 = vmatpush.bf16.msra.mxu2 %v2200_v39  ;;  %1769 = vmatpush.bf16.msra.mxu3 %v2203_v58 }
 0xb31   : > { %1770 = vmatpush.bf16.msra.mxu3 %v2202_v59 }
 0xb35   : > { %1771 = vmatpush.bf16.msra.mxu3 %v2201_v60 }
 0xb3c   : > { %2102 = vmatmul.msk.bf16.vlgmr.msrb.gmra.mxu2 %vm816_vm5, %v1530_v1 }
 0xbaf   : > { %v1417_v3 = vpop.f32.mrf.mxu2 }
 0xbb0   : > { %v1421_v40 = vpack.c.bf16 %v1417_v3, %v1417_v3 }
 0xbb2   : > { %2115 = vmatmul.msk.bf16.vlgmr.msra.gmra.mxu1 %vm816_vm5, %v1421_v40 }
 0xbb7   : > { %v1419_v4 = vpop.f32.mrf.mxu2 }
 0xbbf   : > { %v1547_v6 = vpop.f32.mrf.mxu2 }
 0xbc0   : > { %v1551_v7 = vmul.f32 0.25, %v1547_v6 }
 0xbc2   : > { %v1552_v8 = vadd.f32 %v2623_v5, %v1551_v7 }
 0xbc4   : > { %v1553_v9 = vsel %vm841_vm7, %v1552_v8, -inf }
 0xbc5   : > { %1554 = vmax.xlane.f32.xlu0 %v1553_v9 }
 0xbc7   : > { %v1549_v11 = vpop.f32.mrf.mxu2 }
 0xc2f   : > { %v1629_v12 = vpop.f32.mrf.mxu1 }
 0xc37   : > { %v1631_v14 = vpop.f32.mrf.mxu1 }
 0xc38   : > { %v1555_v15 = vpop.xlane.xlu0 %1554 }
 0xc39   : > { %v1556_v16 = vsub.f32 %v1552_v8, %v1555_v15 }
 0xc3b   : > { %v1557_v17 = vmul.f32 1.442695, %v1556_v16 }
 0xc3d   : > { %2296 = vpow2.f32 %v1557_v17 }
 0xc43   : > { %v2297_v18 = vpop.eup %2296 }
 0xc44   : > { %v1559_v19 = vsel %vm841_vm7, %v2297_v18, 0.0 }
 0xc45   : > { %1560 = vadd.xlane.f32.xlu1 %v1559_v19 }
 0xcb8   : > { %v1561_v5 = vpop.xlane.xlu1 %1560 }
 0xcb9   : > { %2298 = vrcp.f32 %v1561_v5 }
 0xcbf   : > { %v2299_v21 = vpop.eup %2298 }
 0xcc0   : > { %v1563_v22 = vmul.f32 %v2299_v21, %v2297_v18 }
 0xcc2   : > { %v1564_v23 = vpack.c.bf16 %v1563_v22, %v1563_v22 }
 0xcc4   : > { %2103 = vmatmul.msk.bf16.vlgmr.msrb.gmra.mxu3 %vm841_vm7, %v1564_v23 }
 0xd47   : > { %v1581_v24 = vpop.f32.mrf.mxu3 }
 0xd48   : > { %v1585_v25 = vpack.c.bf16 %v1581_v24, %v1581_v24 }
 0xd4a   : > { %2110 = vmatmul.msk.bf16.vlgmr.msra.gmra.mxu0 %vm816_vm5, %v1585_v25 }
 0xd4f   : > { %v1583_v26 = vpop.f32.mrf.mxu3 }
 0xdc7   : > { %v1607_v28 = vpop.f32.mrf.mxu0 }
 0xdc8   : > { %v1630_v29 = vadd.f32 %v1629_v12, %v1607_v28  ;;  %v2271_v12 = vld [vmem:[%s2884_s16 + $0x1] ss:$0 sm:$0xff] }
 0xdca   : > { %v1638_v30 = vadd.f32 %v2267_v27, %v1630_v29 }
 0xdcc   : > { %v1639_v31 = vadd.f32 %v1638_v30, %v2729_v13  ;;  %v2199_v13 = vld [vmem:[%s2877_s9 + $0x10] sm:$0xff] }
 0xdcd   : > { %1707 = vmatpush.bf16.msra.mxu2 %v2199_v13 }
 0xdce   : > { %v1644_v32 = vsel %vm673_vm0, %v1639_v31, 0.0 }
 0xdcf   : > { %1645 = vadd.xlane.f32.xlu2 %v1644_v32  ;;  %v1609_v33 = vpop.f32.mrf.mxu0  ;;  %v2272_v32 = vld [vmem:[%s2887_s19 + $0x1] ss:$0 sm:$0xff] }
 0xe42   : > { %v1646_v34 = vpop.xlane.xlu2 %1645 }
 0xe43   : > { %v1647_v35 = vmul.f32 %v1646_v34, %v2545_v10  ;;  %v2273_v34 = vld [vmem:[%s2888_s20 + $0x1] ss:$0 sm:$0xff] }
 0xe45   : > { %v1648_v36 = vsub.f32 %v1639_v31, %v1647_v35 }
 0xe47   : > { %v1649_v37 = vmul.f32 %v1648_v36, %v1648_v36 }
 0xe49   : > { %v1650_v38 = vsel %vm673_vm0, %v1649_v37, 0.0 }
 0xe4a   : > { %1651 = vadd.xlane.f32.xlu0 %v1650_v38 }
 0xebd   : > { %v1652_v41 = vpop.xlane.xlu0 %1651 }
 0xebe   : > { %v1653_v42 = vmul.f32 %v1652_v41, %v2545_v10 }
 0xec0   : > { %v1654_v43 = vadd.f32 1e-12, %v1653_v42 }
 0xec2   : > { %2300 = vrsqrt.f32 %v1654_v43  ;;  %vm1661_vm1 = vweird.f32 %v1654_v43 }
 0xec8   : > { %v2301_v44 = vpop.eup %2300 }
 0xec9   : > { %v1656_v45 = vmul.f32 %v2301_v44, %v1654_v43  ;;  %vm1662_vm15 = vweird.f32 %v2301_v44 }
 0xeca   : > { %vm1663_vm2 = vmor %vm1661_vm1, %vm1662_vm15 }
 0xecb   : > { %v1657_v46 = vmul.f32 %v2301_v44, %v1656_v45 }
 0xecd   : > { %v1658_v47 = vmul.f32 0.5, %v1657_v46 }
 0xecf   : > { %v1659_v48 = vsub.f32 1.5, %v1658_v47 }
 0xed1   : > { %v1660_v49 = vmul.f32 %v2301_v44, %v1659_v48 }
 0xed3   : > { %v1664_v51 = vsel %vm1663_vm2, %v2301_v44, %v1660_v49 }
 0xed4   : > { %v1665_v53 = vmul.f32 %v1664_v51, %v1648_v36 }
 0xed6   : > { %v1669_v54 = vmul.f32 %v2268_v50, %v1665_v53 }
 0xed8   : > { %v1673_v55 = vadd.f32 %v2269_v52, %v1669_v54 }
 0xeda   : > { %v1674_v56 = vpack.c.bf16 %v1673_v55, %v1673_v55 }
 0xedc   : > { %2132 = vmatmul.msk.bf16.vlgmr.msra.gmra.mxu2 %vm673_vm0, %v1674_v56 }
 0xf5f   : > { %v1709_v62 = vpop.f32.mrf.mxu2 }
 0xf60   : > { %v1710_v63 = vadd.f32 %v2270_v61, %v1709_v62 }
 0xf62   : > { %v1714_v0 = vmul.f32 0.044715, %v1710_v63  ;;  %v1713_v7 = vmul.f32 0.5, %v1710_v63 }
 0xf64   : > { %v1715_v1 = vmul.f32 %v1714_v0, %v1710_v63 }
 0xf66   : > { %v1716_v2 = vmul.f32 %v1715_v1, %v1710_v63 }
 0xf67   : > { %v1711_v3 = vpop.f32.mrf.mxu2 }
 0xf68   : > { %v1717_v40 = vadd.f32 %v1716_v2, %v1710_v63 }
 0xf6a   : > { %v1718_v4 = vmul.f32 0.7978846, %v1717_v40 }
 0xf6c   : > { %2302 = vtanh.f32 %v1718_v4 }
 0xf72   : > { %v2303_v6 = vpop.eup %2302 }
 0xf73   : > { %v1720_v8 = vadd.f32 1.0, %v2303_v6 }
 0xf75   : > { %v1721_v9 = vmul.f32 %v1720_v8, %v1713_v7 }
 0xf77   : > { %v1722_v11 = vpack.c.bf16 %v1721_v9, %v1721_v9 }
 0xf79   : > { %2158 = vmatmul.msk.bf16.vlgmr.msra.gmra.mxu3 %vm1207_vm11, %v1722_v11 }
 0xffc   : > { %v1773_v14 = vpop.f32.mrf.mxu3 }
 0xffd   : > { %v1774_v15 = vadd.f32 %v2271_v12, %v1773_v14 }
 0xfff   : > { %v1777_v16 = vadd.f32 %v1774_v15, %v1673_v55 }
0x1001   : > { %v1782_v17 = vsel %vm673_vm0, %v1777_v16, 0.0 }
0x1002   : > { %1783 = vadd.xlane.f32.xlu1 %v1782_v17 }
0x1004   : > { %v1775_v18 = vpop.f32.mrf.mxu3 }
0x1075   : > { %v1784_v19 = vpop.xlane.xlu1 %1783 }
0x1076   : > { %v1785_v20 = vmul.f32 %v1784_v19, %v2545_v10 }
0x1078   : > { %v1786_v5 = vsub.f32 %v1777_v16, %v1785_v20 }
0x107a   : > { %v1787_v21 = vmul.f32 %v1786_v5, %v1786_v5 }
0x107c   : > { %v1788_v22 = vsel %vm673_vm0, %v1787_v21, 0.0 }
0x107d   : > { %1789 = vadd.xlane.f32.xlu2 %v1788_v22 }
0x10f0   : > { %v1790_v23 = vpop.xlane.xlu2 %1789 }
0x10f1   : > { %v1791_v24 = vmul.f32 %v1790_v23, %v2545_v10 }
0x10f3   : > { %v1792_v25 = vadd.f32 1e-12, %v1791_v24 }
0x10f5   : > { %2304 = vrsqrt.f32 %v1792_v25  ;;  %vm1799_vm4 = vweird.f32 %v1792_v25 }
0x10fb   : > { %v2305_v26 = vpop.eup %2304 }
0x10fc   : > { %v1794_v27 = vmul.f32 %v2305_v26, %v1792_v25  ;;  %vm1800_vm3 = vweird.f32 %v2305_v26 }
0x10fd   : > { %vm1801_vm5 = vmor %vm1799_vm4, %vm1800_vm3 }
0x10fe   : > { %v1795_v28 = vmul.f32 %v2305_v26, %v1794_v27 }
0x1100   : > { %v1796_v29 = vmul.f32 0.5, %v1795_v28 }
0x1102   : > { %v1797_v30 = vsub.f32 1.5, %v1796_v29 }
0x1104   : > { %v1798_v31 = vmul.f32 %v2305_v26, %v1797_v30 }
0x1106   : > { %v1802_v10 = vsel %vm1801_vm5, %v2305_v26, %v1798_v31 }
0x1107   : > { %v1803_v33 = vmul.f32 %v1802_v10, %v1786_v5 }
0x1109   : > { %v1807_v35 = vmul.f32 %v2272_v32, %v1803_v33 }
0x110b   : > { %v1811_v36 = vadd.f32 %v2273_v34, %v1807_v35 }
0x110d   : > { %1812 = vst.msk [vmem:[%s658_s0] sm:$0xff] %vm673_vm0, %v1811_v36 }
0x110e   : > { %2333 = shalt.err (!%p2330_p3)
}
0x110f   : > { %2205 = dma.vmem_to_hbm [thread:$0]  (%p2519_p5), %s1827_s3, 128, %s1829_s6, %s1814_s2  }
0x1110 PF: > { %s2932_s0 = sld [smem:[#allocation7_spill]] }
0x1111   : > { %s2933_s24 = sld [smem:[#allocation5_spill]] }
0x1116   : > { %p2211_p4 = scmp.ge.s32.totalorder %s2932_s0, 2 }
0x1117   : > { %s1840_s7 = sand.u32 1, %s2933_s24  }
0x1118   : > { %p2208_p7 = pnand %p2211_p4, %p2523_p6  ;;  %s1841_s27 = scalar_lea.sflag [#allocation3], %s1840_s7 }
0x111a   : > { %p2209_p8 = pneg %p2208_p7 }
0x111c   : > { %2351 = dma.done.wait (%p2209_p8), %s1841_s27, 128  }
0x111d   : > { %2353 = vsyncadd (%p2209_p8), %s1841_s27, 4294967168  ;;  %s2935_s27 = sld [smem:[#allocation8_spill]]  ;;  %s2938_s2 = smov %s2360_s25 }
0x111e   : > { %s2936_s26 = sld [smem:[#allocation6_spill]] }
0x111f   : > { %s2937_s23 = sld [smem:[#allocation9_spill]] }
0x1123   : > { %p31_p9 = scmp.ge.s32.totalorder %s2935_s27, 4  }
0x1124   : > { %s2939_s25 = smov %s2936_s26 }
0x1125   : > { %s2940_s26 = smov %s2937_s23  ;;  %33 = sbr.rel (!%p31_p9) target bundleno = 13 (0xd), region = 172 }
0x112a   :  { %1847 = vsyncpa [#allocation3], 1 }
0x112b   :  { %1849 = vsyncpa [#allocation3 + $0x1], 1 }

</bundles_post_ra>
